<compile_context>
chip_gen: v7x
topology: tpu7x:2x2x1
jax: 0.10.0
libtpu: 0.0.40
codegen_flags: <defaults>
</compile_context>

<pallas_src>
import functools
import math

import jax
import jax.numpy as jnp
from jax.experimental import pallas as pl
from jax.experimental.pallas import tpu as pltpu

# ----- small BERT-like config (bertmodel_size scaled down 768 -> 32) -----
VOCAB = 100
HIDDEN = 32
N_LAYERS = 2
N_HEADS = 2
HEAD_DIM = HIDDEN // N_HEADS
INTERMEDIATE = 64
MAX_POS = 16
NCLASSES = 3
LN_EPS = 1e-12
LANE = 128  # lane-dense padding width

TABLE_ROWS = 128                          # >= VOCAB + MAX_POS, aligned
W_ROWS = 3 * HIDDEN + INTERMEDIATE        # 160 rows/layer: wqkv | wo | w1 | w2
OFF_WQKV, OFF_WO, OFF_W1, OFF_W2 = 0, HIDDEN, 2 * HIDDEN, 3 * HIDDEN
# v_layers rows: 0 bqkv | 1 bo | 2 ln1_g | 3 ln1_b | 4 b1 | 5 b2 | 6 ln2_g | 7 ln2_b
# v_head   rows: 0 emb_ln_g | 1 emb_ln_b | 2 bp | 3 bc(lane-padded)
assert VOCAB + MAX_POS <= TABLE_ROWS


# ---------------- fused Pallas kernel ----------------
def _bert_fused_kernel(ids_ref, table_ref, wl_ref, vl_ref, wh_ref, vh_ref,
                       out_ref, *, batch, seq):
    f32, bf16 = jnp.float32, jnp.bfloat16
    bs = batch * seq

    def layernorm(x, g, b):
        mean = jnp.mean(x, axis=-1, keepdims=True)
        xc = x - mean
        var = jnp.mean(xc * xc, axis=-1, keepdims=True)
        return xc * jax.lax.rsqrt(var + LN_EPS) * g + b

    def gelu(x):
        # TODO(synk): reference BERT uses exact erf-GELU; tanh approximation used (EUP-friendly).
        c = math.sqrt(2.0 / math.pi)
        return 0.5 * x * (1.0 + jnp.tanh(c * (x + 0.044715 * x * x * x)))

    # ---- embeddings: one-hot (token row + position/type row) @ packed table ----
    ids = ids_ref[...]                                                    # (B*S, 1) i32
    col = jax.lax.broadcasted_iota(jnp.int32, (bs, TABLE_ROWS), 1)
    row = jax.lax.broadcasted_iota(jnp.int32, (bs, TABLE_ROWS), 0)
    if (seq & (seq - 1)) == 0:
        pos = jnp.bitwise_and(row, seq - 1)
    else:
        pos = jax.lax.rem(row, seq)
    hit = jnp.logical_or(col == ids, col == (VOCAB + pos))
    onehot = jnp.where(hit, 1.0, 0.0).astype(bf16)                        # (B*S, 128)
    emb = jnp.dot(onehot, table_ref[...], preferred_element_type=f32)     # (B*S, H)
    x = layernorm(emb, vh_ref[0:1, 0:HIDDEN], vh_ref[1:2, 0:HIDDEN])      # f32

    # ---- encoder layers (static unroll, L=2) ----
    for l in range(N_LAYERS):
        wqkv = wl_ref[l, OFF_WQKV:OFF_WQKV + HIDDEN, 0:3 * HIDDEN]        # (H, 3H) bf16
        wo = wl_ref[l, OFF_WO:OFF_WO + HIDDEN, 0:HIDDEN]                  # (H, H)
        w1 = wl_ref[l, OFF_W1:OFF_W1 + HIDDEN, 0:INTERMEDIATE]            # (H, I)
        w2 = wl_ref[l, OFF_W2:OFF_W2 + INTERMEDIATE, 0:HIDDEN]            # (I, H)
        bqkv = vl_ref[l, 0:1, 0:3 * HIDDEN]
        bo = vl_ref[l, 1:2, 0:HIDDEN]
        ln1g, ln1b = vl_ref[l, 2:3, 0:HIDDEN], vl_ref[l, 3:4, 0:HIDDEN]
        b1 = vl_ref[l, 4:5, 0:INTERMEDIATE]
        b2 = vl_ref[l, 5:6, 0:HIDDEN]
        ln2g, ln2b = vl_ref[l, 6:7, 0:HIDDEN], vl_ref[l, 7:8, 0:HIDDEN]

        # fused QKV projection (1/sqrt(Dh) already folded into Wq/bq at pack time)
        qkv = jnp.dot(x.astype(bf16), wqkv, preferred_element_type=f32) + bqkv
        qkv_b = qkv.astype(bf16)                                          # (B*S, 3H)

        # per-head attention (static N_HEADS=2 loop); reshape-based (B,S,Dh) views,
        # no attention mask (full-length sequences assumed, token_type_ids=None).
        ctx_heads = []
        for h in range(N_HEADS):
            q_h = qkv_b[:, h * HEAD_DIM:(h + 1) * HEAD_DIM].reshape(batch, seq, HEAD_DIM)
            k_h = qkv_b[:, HIDDEN + h * HEAD_DIM:
                        HIDDEN + (h + 1) * HEAD_DIM].reshape(batch, seq, HEAD_DIM)
            v_h = qkv_b[:, 2 * HIDDEN + h * HEAD_DIM:
                        2 * HIDDEN + (h + 1) * HEAD_DIM].reshape(batch, seq, HEAD_DIM)
            s = jnp.einsum('bqd,bkd->bqk', q_h, k_h, preferred_element_type=f32)
            m = jnp.max(s, axis=-1, keepdims=True)
            p = jnp.exp(s - m)                                            # f32 stats
            inv = pl.reciprocal(jnp.sum(p, axis=-1, keepdims=True), approx=True)
            ctx = jnp.einsum('bqk,bkd->bqd', p.astype(bf16), v_h,
                             preferred_element_type=f32) * inv            # (B, S, Dh)
            ctx_heads.append(ctx.reshape(bs, HEAD_DIM))
        ctx_merged = jnp.concatenate(ctx_heads, axis=1)                   # (B*S, H), head-major lanes

        # single output-projection matmul + fused bias/residual/LayerNorm
        attn = jnp.dot(ctx_merged.astype(bf16), wo, preferred_element_type=f32) + bo
        x = layernorm(attn + x, ln1g, ln1b)

        # feed-forward + fused residual LayerNorm
        h1 = gelu(jnp.dot(x.astype(bf16), w1, preferred_element_type=f32) + b1)
        ffn = jnp.dot(h1.astype(bf16), w2, preferred_element_type=f32) + b2
        x = layernorm(ffn + x, ln2g, ln2b)

    # ---- pooler on [CLS] rows (static strided slice) + classifier ----
    cls = x.reshape(batch, seq, HIDDEN)[:, 0, :]                          # (B, H)
    wp = wh_ref[0:HIDDEN, 0:HIDDEN]
    wc = wh_ref[HIDDEN:2 * HIDDEN, 0:LANE]
    bp = vh_ref[2:3, 0:HIDDEN]
    bc = vh_ref[3:4, 0:LANE]
    pooled = jnp.tanh(jnp.dot(cls.astype(bf16), wp, preferred_element_type=f32) + bp)
    # TODO(synk): self.drop(pooled_out) is identity at inference; training-mode dropout
    #             would need pltpu.prng_* masking in-kernel.
    logits = jnp.dot(pooled.astype(bf16), wc, preferred_element_type=f32) + bc  # (B, 128) lane-dense
    out_ref[...] = logits.astype(out_ref.dtype)


# ---------------- parameters (deterministic, synthetic) ----------------
def init_params(key):
    def nrm(k, shape, std=0.02):
        return jax.random.normal(k, shape, jnp.float32) * std

    keys = iter(jax.random.split(key, 16 * N_LAYERS + 16))
    p = {
        "word_emb": nrm(next(keys), (VOCAB, HIDDEN)),
        "pos_emb": nrm(next(keys), (MAX_POS, HIDDEN)),
        "type_emb": nrm(next(keys), (2, HIDDEN)),
        "emb_ln_g": jnp.ones((HIDDEN,), jnp.float32),
        "emb_ln_b": jnp.zeros((HIDDEN,), jnp.float32),
        "layers": [],
        "wp": nrm(next(keys), (HIDDEN, HIDDEN)),        # pooler Linear + tanh
        "bp": jnp.zeros((HIDDEN,), jnp.float32),
        "wc": nrm(next(keys), (HIDDEN, NCLASSES)),      # self.linear = nn.Linear(H, nclasses)
        "bc": jnp.zeros((NCLASSES,), jnp.float32),
    }
    for _ in range(N_LAYERS):
        p["layers"].append(dict(
            wq=nrm(next(keys), (HIDDEN, HIDDEN)), bq=jnp.zeros((HIDDEN,), jnp.float32),
            wk=nrm(next(keys), (HIDDEN, HIDDEN)), bk=jnp.zeros((HIDDEN,), jnp.float32),
            wv=nrm(next(keys), (HIDDEN, HIDDEN)), bv=jnp.zeros((HIDDEN,), jnp.float32),
            wo=nrm(next(keys), (HIDDEN, HIDDEN)), bo=jnp.zeros((HIDDEN,), jnp.float32),
            ln1_g=jnp.ones((HIDDEN,), jnp.float32), ln1_b=jnp.zeros((HIDDEN,), jnp.float32),
            w1=nrm(next(keys), (HIDDEN, INTERMEDIATE)), b1=jnp.zeros((INTERMEDIATE,), jnp.float32),
            w2=nrm(next(keys), (INTERMEDIATE, HIDDEN)), b2=jnp.zeros((HIDDEN,), jnp.float32),
            ln2_g=jnp.ones((HIDDEN,), jnp.float32), ln2_b=jnp.zeros((HIDDEN,), jnp.float32),
        ))
    return p


def pack_params(p):
    """One-time packing into 5 kernel-ready slabs (run ONCE, outside the jitted forward)."""
    bf16 = jnp.bfloat16
    scale = 1.0 / math.sqrt(HEAD_DIM)

    # embedding table: word rows, then (pos + type0) rows, zero-padded to 128 rows
    table = jnp.zeros((TABLE_ROWS, HIDDEN), jnp.float32)
    table = table.at[:VOCAB].set(p["word_emb"])
    table = table.at[VOCAB:VOCAB + MAX_POS].set(p["pos_emb"] + p["type_emb"][0][None, :])

    w_layers = jnp.zeros((N_LAYERS, W_ROWS, LANE), jnp.float32)
    v_layers = jnp.zeros((N_LAYERS, 8, LANE), jnp.float32)
    for l, lp in enumerate(p["layers"]):
        wqkv = jnp.concatenate([lp["wq"] * scale, lp["wk"], lp["wv"]], axis=1)   # fold 1/sqrt(Dh)
        bqkv = jnp.concatenate([lp["bq"] * scale, lp["bk"], lp["bv"]])
        w_layers = w_layers.at[l, OFF_WQKV:OFF_WQKV + HIDDEN, 0:3 * HIDDEN].set(wqkv)
        w_layers = w_layers.at[l, OFF_WO:OFF_WO + HIDDEN, 0:HIDDEN].set(lp["wo"])
        w_layers = w_layers.at[l, OFF_W1:OFF_W1 + HIDDEN, 0:INTERMEDIATE].set(lp["w1"])
        w_layers = w_layers.at[l, OFF_W2:OFF_W2 + INTERMEDIATE, 0:HIDDEN].set(lp["w2"])
        v_layers = v_layers.at[l, 0, 0:3 * HIDDEN].set(bqkv)
        v_layers = v_layers.at[l, 1, 0:HIDDEN].set(lp["bo"])
        v_layers = v_layers.at[l, 2, 0:HIDDEN].set(lp["ln1_g"])
        v_layers = v_layers.at[l, 3, 0:HIDDEN].set(lp["ln1_b"])
        v_layers = v_layers.at[l, 4, 0:INTERMEDIATE].set(lp["b1"])
        v_layers = v_layers.at[l, 5, 0:HIDDEN].set(lp["b2"])
        v_layers = v_layers.at[l, 6, 0:HIDDEN].set(lp["ln2_g"])
        v_layers = v_layers.at[l, 7, 0:HIDDEN].set(lp["ln2_b"])

    w_head = jnp.zeros((2 * HIDDEN, LANE), jnp.float32)
    w_head = w_head.at[0:HIDDEN, 0:HIDDEN].set(p["wp"])
    w_head = w_head.at[HIDDEN:2 * HIDDEN, 0:NCLASSES].set(p["wc"])

    v_head = jnp.zeros((4, LANE), jnp.float32)
    v_head = v_head.at[0, 0:HIDDEN].set(p["emb_ln_g"])
    v_head = v_head.at[1, 0:HIDDEN].set(p["emb_ln_b"])
    v_head = v_head.at[2, 0:HIDDEN].set(p["bp"])
    v_head = v_head.at[3, 0:NCLASSES].set(p["bc"])

    return dict(table=table.astype(bf16),
                w_layers=w_layers.astype(bf16),
                v_layers=v_layers,
                w_head=w_head.astype(bf16),
                v_head=v_head)


# ---------------- forward (== BertSeqFT.forward) ----------------
def bert_seq_ft_forward(packed, seq_bert):
    B, S = seq_bert.shape
    ids = seq_bert.astype(jnp.int32).reshape(B * S, 1)

    vmem = pl.BlockSpec(memory_space=pltpu.MemorySpace.VMEM)
    out = pl.pallas_call(
        functools.partial(_bert_fused_kernel, batch=B, seq=S),
        out_shape=jax.ShapeDtypeStruct((B, LANE), jnp.float32),
        in_specs=[vmem] * 6,
        out_specs=vmem,
    )(ids, packed["table"], packed["w_layers"], packed["v_layers"],
      packed["w_head"], packed["v_head"])

    # o = self.linear(pooled_out); return (o, 0)  (LogSoftmax is defined but unused)
    logits = out[:, :NCLASSES]
    return logits, 0


if __name__ == "__main__":
    key = jax.random.PRNGKey(0)
    pkey, ikey = jax.random.split(key)
    params = init_params(pkey)
    packed = jax.device_put(pack_params(params))          # one-time packing, off the hot path

    seq_bert = jax.random.randint(ikey, (2, 8), 0, VOCAB)  # (batch=2, seqlen=8) token ids

    forward = jax.jit(bert_seq_ft_forward)
    logits, aux = forward(packed, seq_bert)
    jax.block_until_ready(logits)
    assert logits.shape == (2, NCLASSES)
    assert bool(aux == 0)
    assert bool(jnp.all(jnp.isfinite(logits)))
    print("KERNEL_OK")
</pallas_src>

<mosaic_0001>
module attributes {stable_mosaic.version = 11 : i64} {
  func.func @_bert_fused_kernel(%arg0: memref<16x1xi32, #tpu.memory_space<vmem>>, %arg1: memref<128x32xbf16, #tpu.memory_space<vmem>>, %arg2: memref<2x160x128xbf16, #tpu.memory_space<vmem>>, %arg3: memref<2x8x128xf32, #tpu.memory_space<vmem>>, %arg4: memref<64x128xbf16, #tpu.memory_space<vmem>>, %arg5: memref<4x128xf32, #tpu.memory_space<vmem>>, %arg6: memref<2x128xf32, #tpu.memory_space<vmem>>) attributes {dimension_semantics = [], scalar_prefetch = 0 : i64, scratch_operands = 0 : i64, tpu.core_type = #tpu.core_type<tc>} {
    %c0 = arith.constant 0 : index
    %c0_0 = arith.constant 0 : index
    %0 = vector.load %arg0[%c0, %c0_0] : memref<16x1xi32, #tpu.memory_space<vmem>>, vector<16x1xi32>
    %1 = tpu.iota {dimensions = array<i32: 1>} : vector<16x128xi32>
    %2 = tpu.iota {dimensions = array<i32: 0>} : vector<16x128xi32>
    %c7_i32 = arith.constant 7 : i32
    %3 = vector.broadcast %c7_i32 : i32 to vector<16x128xi32>
    %4 = arith.andi %2, %3 : vector<16x128xi32>
    %5 = vector.broadcast %0 : vector<16x1xi32> to vector<16x128xi32>
    %6 = arith.cmpi eq, %1, %5 : vector<16x128xi32>
    %c100_i32 = arith.constant 100 : i32
    %7 = vector.broadcast %c100_i32 : i32 to vector<16x128xi32>
    %8 = arith.addi %7, %4 : vector<16x128xi32>
    %9 = arith.cmpi eq, %1, %8 : vector<16x128xi32>
    %10 = arith.ori %6, %9 : vector<16x128xi1>
    %cst = arith.constant 1.000000e+00 : f32
    %cst_1 = arith.constant 0.000000e+00 : f32
    %11 = vector.broadcast %cst : f32 to vector<16x128xf32>
    %12 = vector.broadcast %cst_1 : f32 to vector<16x128xf32>
    %13 = arith.select %10, %11, %12 : vector<16x128xi1>, vector<16x128xf32>
    %14 = arith.truncf %13 : vector<16x128xf32> to vector<16x128xbf16>
    %c0_2 = arith.constant 0 : index
    %c0_3 = arith.constant 0 : index
    %15 = vector.load %arg1[%c0_2, %c0_3] : memref<128x32xbf16, #tpu.memory_space<vmem>>, vector<128x32xbf16>
    %cst_4 = arith.constant dense<0.000000e+00> : vector<16x32xf32>
    %16 = tpu.matmul %14, %15, %cst_4 {dimension_numbers = #tpu.dot_dimension_numbers<[1], [0], [0], [1], [0, 0, 1, 1], [], []>} : vector<16x128xbf16>, vector<128x32xbf16>, vector<16x32xf32> -> vector<16x32xf32>
    %c0_5 = arith.constant 0 : index
    %c0_6 = arith.constant 0 : index
    %17 = vector.load %arg5[%c0_5, %c0_6] : memref<4x128xf32, #tpu.memory_space<vmem>>, vector<1x32xf32>
    %c1 = arith.constant 1 : index
    %c0_7 = arith.constant 0 : index
    %18 = vector.load %arg5[%c1, %c0_7] : memref<4x128xf32, #tpu.memory_space<vmem>>, vector<1x32xf32>
    %cst_8 = arith.constant dense<0.000000e+00> : vector<16xf32>
    %19 = vector.multi_reduction <add>, %16, %cst_8 [1] : vector<16x32xf32> to vector<16xf32>
    %20 = vector.shape_cast %19 : vector<16xf32> to vector<16x1xf32>
    %cst_9 = arith.constant 3.200000e+01 : f32
    %21 = vector.broadcast %cst_9 : f32 to vector<16x1xf32>
    %22 = arith.divf %20, %21 : vector<16x1xf32>
    %23 = vector.broadcast %22 : vector<16x1xf32> to vector<16x32xf32>
    %24 = arith.subf %16, %23 : vector<16x32xf32>
    %25 = arith.mulf %24, %24 : vector<16x32xf32>
    %cst_10 = arith.constant dense<0.000000e+00> : vector<16xf32>
    %26 = vector.multi_reduction <add>, %25, %cst_10 [1] : vector<16x32xf32> to vector<16xf32>
    %27 = vector.shape_cast %26 : vector<16xf32> to vector<16x1xf32>
    %cst_11 = arith.constant 3.200000e+01 : f32
    %28 = vector.broadcast %cst_11 : f32 to vector<16x1xf32>
    %29 = arith.divf %27, %28 : vector<16x1xf32>
    %cst_12 = arith.constant 9.99999996E-13 : f32
    %30 = vector.broadcast %cst_12 : f32 to vector<16x1xf32>
    %31 = arith.addf %29, %30 : vector<16x1xf32>
    %32 = math.rsqrt %31 : vector<16x1xf32>
    %33 = vector.broadcast %32 : vector<16x1xf32> to vector<16x32xf32>
    %34 = arith.mulf %24, %33 : vector<16x32xf32>
    %35 = vector.broadcast %17 : vector<1x32xf32> to vector<16x32xf32>
    %36 = arith.mulf %34, %35 : vector<16x32xf32>
    %37 = vector.broadcast %18 : vector<1x32xf32> to vector<16x32xf32>
    %38 = arith.addf %36, %37 : vector<16x32xf32>
    %c0_13 = arith.constant 0 : index
    %c0_14 = arith.constant 0 : index
    %c0_15 = arith.constant 0 : index
    %39 = vector.load %arg2[%c0_13, %c0_14, %c0_15] : memref<2x160x128xbf16, #tpu.memory_space<vmem>>, vector<1x32x96xbf16>
    %40 = vector.shape_cast %39 : vector<1x32x96xbf16> to vector<32x96xbf16>
    %c0_16 = arith.constant 0 : index
    %c32 = arith.constant 32 : index
    %c0_17 = arith.constant 0 : index
    %41 = vector.load %arg2[%c0_16, %c32, %c0_17] : memref<2x160x128xbf16, #tpu.memory_space<vmem>>, vector<1x32x32xbf16>
    %42 = vector.shape_cast %41 : vector<1x32x32xbf16> to vector<32x32xbf16>
    %c0_18 = arith.constant 0 : index
    %c64 = arith.constant 64 : index
    %c0_19 = arith.constant 0 : index
    %43 = vector.load %arg2[%c0_18, %c64, %c0_19] : memref<2x160x128xbf16, #tpu.memory_space<vmem>>, vector<1x32x64xbf16>
    %44 = vector.shape_cast %43 : vector<1x32x64xbf16> to vector<32x64xbf16>
    %c0_20 = arith.constant 0 : index
    %c96 = arith.constant 96 : index
    %c0_21 = arith.constant 0 : index
    %45 = vector.load %arg2[%c0_20, %c96, %c0_21] : memref<2x160x128xbf16, #tpu.memory_space<vmem>>, vector<1x64x32xbf16>
    %46 = vector.shape_cast %45 : vector<1x64x32xbf16> to vector<64x32xbf16>
    %c0_22 = arith.constant 0 : index
    %c0_23 = arith.constant 0 : index
    %c0_24 = arith.constant 0 : index
    %47 = vector.load %arg3[%c0_22, %c0_23, %c0_24] : memref<2x8x128xf32, #tpu.memory_space<vmem>>, vector<1x1x96xf32>
    %48 = vector.shape_cast %47 : vector<1x1x96xf32> to vector<1x96xf32>
    %c0_25 = arith.constant 0 : index
    %c1_26 = arith.constant 1 : index
    %c0_27 = arith.constant 0 : index
    %49 = vector.load %arg3[%c0_25, %c1_26, %c0_27] : memref<2x8x128xf32, #tpu.memory_space<vmem>>, vector<1x1x32xf32>
    %50 = vector.shape_cast %49 : vector<1x1x32xf32> to vector<1x32xf32>
    %c0_28 = arith.constant 0 : index
    %c2 = arith.constant 2 : index
    %c0_29 = arith.constant 0 : index
    %51 = vector.load %arg3[%c0_28, %c2, %c0_29] : memref<2x8x128xf32, #tpu.memory_space<vmem>>, vector<1x1x32xf32>
    %52 = vector.shape_cast %51 : vector<1x1x32xf32> to vector<1x32xf32>
    %c0_30 = arith.constant 0 : index
    %c3 = arith.constant 3 : index
    %c0_31 = arith.constant 0 : index
    %53 = vector.load %arg3[%c0_30, %c3, %c0_31] : memref<2x8x128xf32, #tpu.memory_space<vmem>>, vector<1x1x32xf32>
    %54 = vector.shape_cast %53 : vector<1x1x32xf32> to vector<1x32xf32>
    %c0_32 = arith.constant 0 : index
    %c4 = arith.constant 4 : index
    %c0_33 = arith.constant 0 : index
    %55 = vector.load %arg3[%c0_32, %c4, %c0_33] : memref<2x8x128xf32, #tpu.memory_space<vmem>>, vector<1x1x64xf32>
    %56 = vector.shape_cast %55 : vector<1x1x64xf32> to vector<1x64xf32>
    %c0_34 = arith.constant 0 : index
    %c5 = arith.constant 5 : index
    %c0_35 = arith.constant 0 : index
    %57 = vector.load %arg3[%c0_34, %c5, %c0_35] : memref<2x8x128xf32, #tpu.memory_space<vmem>>, vector<1x1x32xf32>
    %58 = vector.shape_cast %57 : vector<1x1x32xf32> to vector<1x32xf32>
    %c0_36 = arith.constant 0 : index
    %c6 = arith.constant 6 : index
    %c0_37 = arith.constant 0 : index
    %59 = vector.load %arg3[%c0_36, %c6, %c0_37] : memref<2x8x128xf32, #tpu.memory_space<vmem>>, vector<1x1x32xf32>
    %60 = vector.shape_cast %59 : vector<1x1x32xf32> to vector<1x32xf32>
    %c0_38 = arith.constant 0 : index
    %c7 = arith.constant 7 : index
    %c0_39 = arith.constant 0 : index
    %61 = vector.load %arg3[%c0_38, %c7, %c0_39] : memref<2x8x128xf32, #tpu.memory_space<vmem>>, vector<1x1x32xf32>
    %62 = vector.shape_cast %61 : vector<1x1x32xf32> to vector<1x32xf32>
    %63 = arith.truncf %38 : vector<16x32xf32> to vector<16x32xbf16>
    %cst_40 = arith.constant dense<0.000000e+00> : vector<16x96xf32>
    %64 = tpu.matmul %63, %40, %cst_40 {dimension_numbers = #tpu.dot_dimension_numbers<[1], [0], [0], [1], [0, 0, 1, 1], [], []>} : vector<16x32xbf16>, vector<32x96xbf16>, vector<16x96xf32> -> vector<16x96xf32>
    %65 = vector.broadcast %48 : vector<1x96xf32> to vector<16x96xf32>
    %66 = arith.addf %64, %65 : vector<16x96xf32>
    %67 = arith.truncf %66 : vector<16x96xf32> to vector<16x96xbf16>
    %68 = vector.extract_strided_slice %67 {offsets = [0, 0], sizes = [16, 16], strides = [1, 1]} : vector<16x96xbf16> to vector<16x16xbf16>
    %69 = vector.shape_cast %68 : vector<16x16xbf16> to vector<2x8x16xbf16>
    %70 = vector.extract_strided_slice %67 {offsets = [0, 32], sizes = [16, 16], strides = [1, 1]} : vector<16x96xbf16> to vector<16x16xbf16>
    %71 = vector.shape_cast %70 : vector<16x16xbf16> to vector<2x8x16xbf16>
    %72 = vector.extract_strided_slice %67 {offsets = [0, 64], sizes = [16, 16], strides = [1, 1]} : vector<16x96xbf16> to vector<16x16xbf16>
    %73 = vector.shape_cast %72 : vector<16x16xbf16> to vector<2x8x16xbf16>
    "tpu.trace_start"() <{level = 10 : i32, message = "bqd,bkd->bqk"}> : () -> ()
    %cst_41 = arith.constant dense<0.000000e+00> : vector<2x8x8xf32>
    %74 = tpu.matmul %69, %71, %cst_41 {dimension_numbers = #tpu.dot_dimension_numbers<[2], [2], [1], [1], [0, 0, 0, 1, 1, 1], [0], [0]>} : vector<2x8x16xbf16>, vector<2x8x16xbf16>, vector<2x8x8xf32> -> vector<2x8x8xf32>
    "tpu.trace_stop"() : () -> ()
    %cst_42 = arith.constant dense<0xFF800000> : vector<2x8xf32>
    %75 = vector.multi_reduction <maximumf>, %74, %cst_42 [2] : vector<2x8x8xf32> to vector<2x8xf32>
    %76 = vector.shape_cast %75 : vector<2x8xf32> to vector<2x8x1xf32>
    %77 = vector.broadcast %76 : vector<2x8x1xf32> to vector<2x8x8xf32>
    %78 = arith.subf %74, %77 : vector<2x8x8xf32>
    %79 = math.exp %78 : vector<2x8x8xf32>
    %cst_43 = arith.constant dense<0.000000e+00> : vector<2x8xf32>
    %80 = vector.multi_reduction <add>, %79, %cst_43 [2] : vector<2x8x8xf32> to vector<2x8xf32>
    %81 = vector.shape_cast %80 : vector<2x8xf32> to vector<2x8x1xf32>
    %82 = tpu.reciprocal %81 {approx = true} : vector<2x8x1xf32> -> vector<2x8x1xf32>
    %83 = arith.truncf %79 : vector<2x8x8xf32> to vector<2x8x8xbf16>
    "tpu.trace_start"() <{level = 10 : i32, message = "bqk,bkd->bqd"}> : () -> ()
    %cst_44 = arith.constant dense<0.000000e+00> : vector<2x8x16xf32>
    %84 = tpu.matmul %83, %73, %cst_44 {dimension_numbers = #tpu.dot_dimension_numbers<[2], [1], [1], [2], [0, 0, 0, 1, 1, 2], [0], [0]>} : vector<2x8x8xbf16>, vector<2x8x16xbf16>, vector<2x8x16xf32> -> vector<2x8x16xf32>
    "tpu.trace_stop"() : () -> ()
    %85 = vector.broadcast %82 : vector<2x8x1xf32> to vector<2x8x16xf32>
    %86 = arith.mulf %84, %85 : vector<2x8x16xf32>
    %87 = vector.shape_cast %86 : vector<2x8x16xf32> to vector<16x16xf32>
    %88 = vector.extract_strided_slice %67 {offsets = [0, 16], sizes = [16, 16], strides = [1, 1]} : vector<16x96xbf16> to vector<16x16xbf16>
    %89 = vector.shape_cast %88 : vector<16x16xbf16> to vector<2x8x16xbf16>
    %90 = vector.extract_strided_slice %67 {offsets = [0, 48], sizes = [16, 16], strides = [1, 1]} : vector<16x96xbf16> to vector<16x16xbf16>
    %91 = vector.shape_cast %90 : vector<16x16xbf16> to vector<2x8x16xbf16>
    %92 = vector.extract_strided_slice %67 {offsets = [0, 80], sizes = [16, 16], strides = [1, 1]} : vector<16x96xbf16> to vector<16x16xbf16>
    %93 = vector.shape_cast %92 : vector<16x16xbf16> to vector<2x8x16xbf16>
    "tpu.trace_start"() <{level = 10 : i32, message = "bqd,bkd->bqk"}> : () -> ()
    %cst_45 = arith.constant dense<0.000000e+00> : vector<2x8x8xf32>
    %94 = tpu.matmul %89, %91, %cst_45 {dimension_numbers = #tpu.dot_dimension_numbers<[2], [2], [1], [1], [0, 0, 0, 1, 1, 1], [0], [0]>} : vector<2x8x16xbf16>, vector<2x8x16xbf16>, vector<2x8x8xf32> -> vector<2x8x8xf32>
    "tpu.trace_stop"() : () -> ()
    %cst_46 = arith.constant dense<0xFF800000> : vector<2x8xf32>
    %95 = vector.multi_reduction <maximumf>, %94, %cst_46 [2] : vector<2x8x8xf32> to vector<2x8xf32>
    %96 = vector.shape_cast %95 : vector<2x8xf32> to vector<2x8x1xf32>
    %97 = vector.broadcast %96 : vector<2x8x1xf32> to vector<2x8x8xf32>
    %98 = arith.subf %94, %97 : vector<2x8x8xf32>
    %99 = math.exp %98 : vector<2x8x8xf32>
    %cst_47 = arith.constant dense<0.000000e+00> : vector<2x8xf32>
    %100 = vector.multi_reduction <add>, %99, %cst_47 [2] : vector<2x8x8xf32> to vector<2x8xf32>
    %101 = vector.shape_cast %100 : vector<2x8xf32> to vector<2x8x1xf32>
    %102 = tpu.reciprocal %101 {approx = true} : vector<2x8x1xf32> -> vector<2x8x1xf32>
    %103 = arith.truncf %99 : vector<2x8x8xf32> to vector<2x8x8xbf16>
    "tpu.trace_start"() <{level = 10 : i32, message = "bqk,bkd->bqd"}> : () -> ()
    %cst_48 = arith.constant dense<0.000000e+00> : vector<2x8x16xf32>
    %104 = tpu.matmul %103, %93, %cst_48 {dimension_numbers = #tpu.dot_dimension_numbers<[2], [1], [1], [2], [0, 0, 0, 1, 1, 2], [0], [0]>} : vector<2x8x8xbf16>, vector<2x8x16xbf16>, vector<2x8x16xf32> -> vector<2x8x16xf32>
    "tpu.trace_stop"() : () -> ()
    %105 = vector.broadcast %102 : vector<2x8x1xf32> to vector<2x8x16xf32>
    %106 = arith.mulf %104, %105 : vector<2x8x16xf32>
    %107 = vector.shape_cast %106 : vector<2x8x16xf32> to vector<16x16xf32>
    %108 = tpu.concatenate %87, %107 in 1 : vector<16x16xf32>, vector<16x16xf32> -> vector<16x32xf32>
    %109 = arith.truncf %108 : vector<16x32xf32> to vector<16x32xbf16>
    %cst_49 = arith.constant dense<0.000000e+00> : vector<16x32xf32>
    %110 = tpu.matmul %109, %42, %cst_49 {dimension_numbers = #tpu.dot_dimension_numbers<[1], [0], [0], [1], [0, 0, 1, 1], [], []>} : vector<16x32xbf16>, vector<32x32xbf16>, vector<16x32xf32> -> vector<16x32xf32>
    %111 = vector.broadcast %50 : vector<1x32xf32> to vector<16x32xf32>
    %112 = arith.addf %110, %111 : vector<16x32xf32>
    %113 = arith.addf %112, %38 : vector<16x32xf32>
    %cst_50 = arith.constant dense<0.000000e+00> : vector<16xf32>
    %114 = vector.multi_reduction <add>, %113, %cst_50 [1] : vector<16x32xf32> to vector<16xf32>
    %115 = vector.shape_cast %114 : vector<16xf32> to vector<16x1xf32>
    %cst_51 = arith.constant 3.200000e+01 : f32
    %116 = vector.broadcast %cst_51 : f32 to vector<16x1xf32>
    %117 = arith.divf %115, %116 : vector<16x1xf32>
    %118 = vector.broadcast %117 : vector<16x1xf32> to vector<16x32xf32>
    %119 = arith.subf %113, %118 : vector<16x32xf32>
    %120 = arith.mulf %119, %119 : vector<16x32xf32>
    %cst_52 = arith.constant dense<0.000000e+00> : vector<16xf32>
    %121 = vector.multi_reduction <add>, %120, %cst_52 [1] : vector<16x32xf32> to vector<16xf32>
    %122 = vector.shape_cast %121 : vector<16xf32> to vector<16x1xf32>
    %cst_53 = arith.constant 3.200000e+01 : f32
    %123 = vector.broadcast %cst_53 : f32 to vector<16x1xf32>
    %124 = arith.divf %122, %123 : vector<16x1xf32>
    %cst_54 = arith.constant 9.99999996E-13 : f32
    %125 = vector.broadcast %cst_54 : f32 to vector<16x1xf32>
    %126 = arith.addf %124, %125 : vector<16x1xf32>
    %127 = math.rsqrt %126 : vector<16x1xf32>
    %128 = vector.broadcast %127 : vector<16x1xf32> to vector<16x32xf32>
    %129 = arith.mulf %119, %128 : vector<16x32xf32>
    %130 = vector.broadcast %52 : vector<1x32xf32> to vector<16x32xf32>
    %131 = arith.mulf %129, %130 : vector<16x32xf32>
    %132 = vector.broadcast %54 : vector<1x32xf32> to vector<16x32xf32>
    %133 = arith.addf %131, %132 : vector<16x32xf32>
    %134 = arith.truncf %133 : vector<16x32xf32> to vector<16x32xbf16>
    %cst_55 = arith.constant dense<0.000000e+00> : vector<16x64xf32>
    %135 = tpu.matmul %134, %44, %cst_55 {dimension_numbers = #tpu.dot_dimension_numbers<[1], [0], [0], [1], [0, 0, 1, 1], [], []>} : vector<16x32xbf16>, vector<32x64xbf16>, vector<16x64xf32> -> vector<16x64xf32>
    %136 = vector.broadcast %56 : vector<1x64xf32> to vector<16x64xf32>
    %137 = arith.addf %135, %136 : vector<16x64xf32>
    %cst_56 = arith.constant 5.000000e-01 : f32
    %138 = vector.broadcast %cst_56 : f32 to vector<16x64xf32>
    %139 = arith.mulf %138, %137 : vector<16x64xf32>
    %cst_57 = arith.constant 4.471500e-02 : f32
    %140 = vector.broadcast %cst_57 : f32 to vector<16x64xf32>
    %141 = arith.mulf %140, %137 : vector<16x64xf32>
    %142 = arith.mulf %141, %137 : vector<16x64xf32>
    %143 = arith.mulf %142, %137 : vector<16x64xf32>
    %144 = arith.addf %137, %143 : vector<16x64xf32>
    %cst_58 = arith.constant 0.797884583 : f32
    %145 = vector.broadcast %cst_58 : f32 to vector<16x64xf32>
    %146 = arith.mulf %145, %144 : vector<16x64xf32>
    %147 = math.tanh %146 : vector<16x64xf32>
    %cst_59 = arith.constant 1.000000e+00 : f32
    %148 = vector.broadcast %cst_59 : f32 to vector<16x64xf32>
    %149 = arith.addf %148, %147 : vector<16x64xf32>
    %150 = arith.mulf %139, %149 : vector<16x64xf32>
    %151 = arith.truncf %150 : vector<16x64xf32> to vector<16x64xbf16>
    %cst_60 = arith.constant dense<0.000000e+00> : vector<16x32xf32>
    %152 = tpu.matmul %151, %46, %cst_60 {dimension_numbers = #tpu.dot_dimension_numbers<[1], [0], [0], [1], [0, 0, 1, 1], [], []>} : vector<16x64xbf16>, vector<64x32xbf16>, vector<16x32xf32> -> vector<16x32xf32>
    %153 = vector.broadcast %58 : vector<1x32xf32> to vector<16x32xf32>
    %154 = arith.addf %152, %153 : vector<16x32xf32>
    %155 = arith.addf %154, %133 : vector<16x32xf32>
    %cst_61 = arith.constant dense<0.000000e+00> : vector<16xf32>
    %156 = vector.multi_reduction <add>, %155, %cst_61 [1] : vector<16x32xf32> to vector<16xf32>
    %157 = vector.shape_cast %156 : vector<16xf32> to vector<16x1xf32>
    %cst_62 = arith.constant 3.200000e+01 : f32
    %158 = vector.broadcast %cst_62 : f32 to vector<16x1xf32>
    %159 = arith.divf %157, %158 : vector<16x1xf32>
    %160 = vector.broadcast %159 : vector<16x1xf32> to vector<16x32xf32>
    %161 = arith.subf %155, %160 : vector<16x32xf32>
    %162 = arith.mulf %161, %161 : vector<16x32xf32>
    %cst_63 = arith.constant dense<0.000000e+00> : vector<16xf32>
    %163 = vector.multi_reduction <add>, %162, %cst_63 [1] : vector<16x32xf32> to vector<16xf32>
    %164 = vector.shape_cast %163 : vector<16xf32> to vector<16x1xf32>
    %cst_64 = arith.constant 3.200000e+01 : f32
    %165 = vector.broadcast %cst_64 : f32 to vector<16x1xf32>
    %166 = arith.divf %164, %165 : vector<16x1xf32>
    %cst_65 = arith.constant 9.99999996E-13 : f32
    %167 = vector.broadcast %cst_65 : f32 to vector<16x1xf32>
    %168 = arith.addf %166, %167 : vector<16x1xf32>
    %169 = math.rsqrt %168 : vector<16x1xf32>
    %170 = vector.broadcast %169 : vector<16x1xf32> to vector<16x32xf32>
    %171 = arith.mulf %161, %170 : vector<16x32xf32>
    %172 = vector.broadcast %60 : vector<1x32xf32> to vector<16x32xf32>
    %173 = arith.mulf %171, %172 : vector<16x32xf32>
    %174 = vector.broadcast %62 : vector<1x32xf32> to vector<16x32xf32>
    %175 = arith.addf %173, %174 : vector<16x32xf32>
    %c1_66 = arith.constant 1 : index
    %c0_67 = arith.constant 0 : index
    %c0_68 = arith.constant 0 : index
    %176 = vector.load %arg2[%c1_66, %c0_67, %c0_68] : memref<2x160x128xbf16, #tpu.memory_space<vmem>>, vector<1x32x96xbf16>
    %177 = vector.shape_cast %176 : vector<1x32x96xbf16> to vector<32x96xbf16>
    %c1_69 = arith.constant 1 : index
    %c32_70 = arith.constant 32 : index
    %c0_71 = arith.constant 0 : index
    %178 = vector.load %arg2[%c1_69, %c32_70, %c0_71] : memref<2x160x128xbf16, #tpu.memory_space<vmem>>, vector<1x32x32xbf16>
    %179 = vector.shape_cast %178 : vector<1x32x32xbf16> to vector<32x32xbf16>
    %c1_72 = arith.constant 1 : index
    %c64_73 = arith.constant 64 : index
    %c0_74 = arith.constant 0 : index
    %180 = vector.load %arg2[%c1_72, %c64_73, %c0_74] : memref<2x160x128xbf16, #tpu.memory_space<vmem>>, vector<1x32x64xbf16>
    %181 = vector.shape_cast %180 : vector<1x32x64xbf16> to vector<32x64xbf16>
    %c1_75 = arith.constant 1 : index
    %c96_76 = arith.constant 96 : index
    %c0_77 = arith.constant 0 : index
    %182 = vector.load %arg2[%c1_75, %c96_76, %c0_77] : memref<2x160x128xbf16, #tpu.memory_space<vmem>>, vector<1x64x32xbf16>
    %183 = vector.shape_cast %182 : vector<1x64x32xbf16> to vector<64x32xbf16>
    %c1_78 = arith.constant 1 : index
    %c0_79 = arith.constant 0 : index
    %c0_80 = arith.constant 0 : index
    %184 = vector.load %arg3[%c1_78, %c0_79, %c0_80] : memref<2x8x128xf32, #tpu.memory_space<vmem>>, vector<1x1x96xf32>
    %185 = vector.shape_cast %184 : vector<1x1x96xf32> to vector<1x96xf32>
    %c1_81 = arith.constant 1 : index
    %c1_82 = arith.constant 1 : index
    %c0_83 = arith.constant 0 : index
    %186 = vector.load %arg3[%c1_81, %c1_82, %c0_83] : memref<2x8x128xf32, #tpu.memory_space<vmem>>, vector<1x1x32xf32>
    %187 = vector.shape_cast %186 : vector<1x1x32xf32> to vector<1x32xf32>
    %c1_84 = arith.constant 1 : index
    %c2_85 = arith.constant 2 : index
    %c0_86 = arith.constant 0 : index
    %188 = vector.load %arg3[%c1_84, %c2_85, %c0_86] : memref<2x8x128xf32, #tpu.memory_space<vmem>>, vector<1x1x32xf32>
    %189 = vector.shape_cast %188 : vector<1x1x32xf32> to vector<1x32xf32>
    %c1_87 = arith.constant 1 : index
    %c3_88 = arith.constant 3 : index
    %c0_89 = arith.constant 0 : index
    %190 = vector.load %arg3[%c1_87, %c3_88, %c0_89] : memref<2x8x128xf32, #tpu.memory_space<vmem>>, vector<1x1x32xf32>
    %191 = vector.shape_cast %190 : vector<1x1x32xf32> to vector<1x32xf32>
    %c1_90 = arith.constant 1 : index
    %c4_91 = arith.constant 4 : index
    %c0_92 = arith.constant 0 : index
    %192 = vector.load %arg3[%c1_90, %c4_91, %c0_92] : memref<2x8x128xf32, #tpu.memory_space<vmem>>, vector<1x1x64xf32>
    %193 = vector.shape_cast %192 : vector<1x1x64xf32> to vector<1x64xf32>
    %c1_93 = arith.constant 1 : index
    %c5_94 = arith.constant 5 : index
    %c0_95 = arith.constant 0 : index
    %194 = vector.load %arg3[%c1_93, %c5_94, %c0_95] : memref<2x8x128xf32, #tpu.memory_space<vmem>>, vector<1x1x32xf32>
    %195 = vector.shape_cast %194 : vector<1x1x32xf32> to vector<1x32xf32>
    %c1_96 = arith.constant 1 : index
    %c6_97 = arith.constant 6 : index
    %c0_98 = arith.constant 0 : index
    %196 = vector.load %arg3[%c1_96, %c6_97, %c0_98] : memref<2x8x128xf32, #tpu.memory_space<vmem>>, vector<1x1x32xf32>
    %197 = vector.shape_cast %196 : vector<1x1x32xf32> to vector<1x32xf32>
    %c1_99 = arith.constant 1 : index
    %c7_100 = arith.constant 7 : index
    %c0_101 = arith.constant 0 : index
    %198 = vector.load %arg3[%c1_99, %c7_100, %c0_101] : memref<2x8x128xf32, #tpu.memory_space<vmem>>, vector<1x1x32xf32>
    %199 = vector.shape_cast %198 : vector<1x1x32xf32> to vector<1x32xf32>
    %200 = arith.truncf %175 : vector<16x32xf32> to vector<16x32xbf16>
    %cst_102 = arith.constant dense<0.000000e+00> : vector<16x96xf32>
    %201 = tpu.matmul %200, %177, %cst_102 {dimension_numbers = #tpu.dot_dimension_numbers<[1], [0], [0], [1], [0, 0, 1, 1], [], []>} : vector<16x32xbf16>, vector<32x96xbf16>, vector<16x96xf32> -> vector<16x96xf32>
    %202 = vector.broadcast %185 : vector<1x96xf32> to vector<16x96xf32>
    %203 = arith.addf %201, %202 : vector<16x96xf32>
    %204 = arith.truncf %203 : vector<16x96xf32> to vector<16x96xbf16>
    %205 = vector.extract_strided_slice %204 {offsets = [0, 0], sizes = [16, 16], strides = [1, 1]} : vector<16x96xbf16> to vector<16x16xbf16>
    %206 = vector.shape_cast %205 : vector<16x16xbf16> to vector<2x8x16xbf16>
    %207 = vector.extract_strided_slice %204 {offsets = [0, 32], sizes = [16, 16], strides = [1, 1]} : vector<16x96xbf16> to vector<16x16xbf16>
    %208 = vector.shape_cast %207 : vector<16x16xbf16> to vector<2x8x16xbf16>
    %209 = vector.extract_strided_slice %204 {offsets = [0, 64], sizes = [16, 16], strides = [1, 1]} : vector<16x96xbf16> to vector<16x16xbf16>
    %210 = vector.shape_cast %209 : vector<16x16xbf16> to vector<2x8x16xbf16>
    "tpu.trace_start"() <{level = 10 : i32, message = "bqd,bkd->bqk"}> : () -> ()
    %cst_103 = arith.constant dense<0.000000e+00> : vector<2x8x8xf32>
    %211 = tpu.matmul %206, %208, %cst_103 {dimension_numbers = #tpu.dot_dimension_numbers<[2], [2], [1], [1], [0, 0, 0, 1, 1, 1], [0], [0]>} : vector<2x8x16xbf16>, vector<2x8x16xbf16>, vector<2x8x8xf32> -> vector<2x8x8xf32>
    "tpu.trace_stop"() : () -> ()
    %cst_104 = arith.constant dense<0xFF800000> : vector<2x8xf32>
    %212 = vector.multi_reduction <maximumf>, %211, %cst_104 [2] : vector<2x8x8xf32> to vector<2x8xf32>
    %213 = vector.shape_cast %212 : vector<2x8xf32> to vector<2x8x1xf32>
    %214 = vector.broadcast %213 : vector<2x8x1xf32> to vector<2x8x8xf32>
    %215 = arith.subf %211, %214 : vector<2x8x8xf32>
    %216 = math.exp %215 : vector<2x8x8xf32>
    %cst_105 = arith.constant dense<0.000000e+00> : vector<2x8xf32>
    %217 = vector.multi_reduction <add>, %216, %cst_105 [2] : vector<2x8x8xf32> to vector<2x8xf32>
    %218 = vector.shape_cast %217 : vector<2x8xf32> to vector<2x8x1xf32>
    %219 = tpu.reciprocal %218 {approx = true} : vector<2x8x1xf32> -> vector<2x8x1xf32>
    %220 = arith.truncf %216 : vector<2x8x8xf32> to vector<2x8x8xbf16>
    "tpu.trace_start"() <{level = 10 : i32, message = "bqk,bkd->bqd"}> : () -> ()
    %cst_106 = arith.constant dense<0.000000e+00> : vector<2x8x16xf32>
    %221 = tpu.matmul %220, %210, %cst_106 {dimension_numbers = #tpu.dot_dimension_numbers<[2], [1], [1], [2], [0, 0, 0, 1, 1, 2], [0], [0]>} : vector<2x8x8xbf16>, vector<2x8x16xbf16>, vector<2x8x16xf32> -> vector<2x8x16xf32>
    "tpu.trace_stop"() : () -> ()
    %222 = vector.broadcast %219 : vector<2x8x1xf32> to vector<2x8x16xf32>
    %223 = arith.mulf %221, %222 : vector<2x8x16xf32>
    %224 = vector.shape_cast %223 : vector<2x8x16xf32> to vector<16x16xf32>
    %225 = vector.extract_strided_slice %204 {offsets = [0, 16], sizes = [16, 16], strides = [1, 1]} : vector<16x96xbf16> to vector<16x16xbf16>
    %226 = vector.shape_cast %225 : vector<16x16xbf16> to vector<2x8x16xbf16>
    %227 = vector.extract_strided_slice %204 {offsets = [0, 48], sizes = [16, 16], strides = [1, 1]} : vector<16x96xbf16> to vector<16x16xbf16>
    %228 = vector.shape_cast %227 : vector<16x16xbf16> to vector<2x8x16xbf16>
    %229 = vector.extract_strided_slice %204 {offsets = [0, 80], sizes = [16, 16], strides = [1, 1]} : vector<16x96xbf16> to vector<16x16xbf16>
    %230 = vector.shape_cast %229 : vector<16x16xbf16> to vector<2x8x16xbf16>
    "tpu.trace_start"() <{level = 10 : i32, message = "bqd,bkd->bqk"}> : () -> ()
    %cst_107 = arith.constant dense<0.000000e+00> : vector<2x8x8xf32>
    %231 = tpu.matmul %226, %228, %cst_107 {dimension_numbers = #tpu.dot_dimension_numbers<[2], [2], [1], [1], [0, 0, 0, 1, 1, 1], [0], [0]>} : vector<2x8x16xbf16>, vector<2x8x16xbf16>, vector<2x8x8xf32> -> vector<2x8x8xf32>
    "tpu.trace_stop"() : () -> ()
    %cst_108 = arith.constant dense<0xFF800000> : vector<2x8xf32>
    %232 = vector.multi_reduction <maximumf>, %231, %cst_108 [2] : vector<2x8x8xf32> to vector<2x8xf32>
    %233 = vector.shape_cast %232 : vector<2x8xf32> to vector<2x8x1xf32>
    %234 = vector.broadcast %233 : vector<2x8x1xf32> to vector<2x8x8xf32>
    %235 = arith.subf %231, %234 : vector<2x8x8xf32>
    %236 = math.exp %235 : vector<2x8x8xf32>
    %cst_109 = arith.constant dense<0.000000e+00> : vector<2x8xf32>
    %237 = vector.multi_reduction <add>, %236, %cst_109 [2] : vector<2x8x8xf32> to vector<2x8xf32>
    %238 = vector.shape_cast %237 : vector<2x8xf32> to vector<2x8x1xf32>
    %239 = tpu.reciprocal %238 {approx = true} : vector<2x8x1xf32> -> vector<2x8x1xf32>
    %240 = arith.truncf %236 : vector<2x8x8xf32> to vector<2x8x8xbf16>
    "tpu.trace_start"() <{level = 10 : i32, message = "bqk,bkd->bqd"}> : () -> ()
    %cst_110 = arith.constant dense<0.000000e+00> : vector<2x8x16xf32>
    %241 = tpu.matmul %240, %230, %cst_110 {dimension_numbers = #tpu.dot_dimension_numbers<[2], [1], [1], [2], [0, 0, 0, 1, 1, 2], [0], [0]>} : vector<2x8x8xbf16>, vector<2x8x16xbf16>, vector<2x8x16xf32> -> vector<2x8x16xf32>
    "tpu.trace_stop"() : () -> ()
    %242 = vector.broadcast %239 : vector<2x8x1xf32> to vector<2x8x16xf32>
    %243 = arith.mulf %241, %242 : vector<2x8x16xf32>
    %244 = vector.shape_cast %243 : vector<2x8x16xf32> to vector<16x16xf32>
    %245 = tpu.concatenate %224, %244 in 1 : vector<16x16xf32>, vector<16x16xf32> -> vector<16x32xf32>
    %246 = arith.truncf %245 : vector<16x32xf32> to vector<16x32xbf16>
    %cst_111 = arith.constant dense<0.000000e+00> : vector<16x32xf32>
    %247 = tpu.matmul %246, %179, %cst_111 {dimension_numbers = #tpu.dot_dimension_numbers<[1], [0], [0], [1], [0, 0, 1, 1], [], []>} : vector<16x32xbf16>, vector<32x32xbf16>, vector<16x32xf32> -> vector<16x32xf32>
    %248 = vector.broadcast %187 : vector<1x32xf32> to vector<16x32xf32>
    %249 = arith.addf %247, %248 : vector<16x32xf32>
    %250 = arith.addf %249, %175 : vector<16x32xf32>
    %cst_112 = arith.constant dense<0.000000e+00> : vector<16xf32>
    %251 = vector.multi_reduction <add>, %250, %cst_112 [1] : vector<16x32xf32> to vector<16xf32>
    %252 = vector.shape_cast %251 : vector<16xf32> to vector<16x1xf32>
    %cst_113 = arith.constant 3.200000e+01 : f32
    %253 = vector.broadcast %cst_113 : f32 to vector<16x1xf32>
    %254 = arith.divf %252, %253 : vector<16x1xf32>
    %255 = vector.broadcast %254 : vector<16x1xf32> to vector<16x32xf32>
    %256 = arith.subf %250, %255 : vector<16x32xf32>
    %257 = arith.mulf %256, %256 : vector<16x32xf32>
    %cst_114 = arith.constant dense<0.000000e+00> : vector<16xf32>
    %258 = vector.multi_reduction <add>, %257, %cst_114 [1] : vector<16x32xf32> to vector<16xf32>
    %259 = vector.shape_cast %258 : vector<16xf32> to vector<16x1xf32>
    %cst_115 = arith.constant 3.200000e+01 : f32
    %260 = vector.broadcast %cst_115 : f32 to vector<16x1xf32>
    %261 = arith.divf %259, %260 : vector<16x1xf32>
    %cst_116 = arith.constant 9.99999996E-13 : f32
    %262 = vector.broadcast %cst_116 : f32 to vector<16x1xf32>
    %263 = arith.addf %261, %262 : vector<16x1xf32>
    %264 = math.rsqrt %263 : vector<16x1xf32>
    %265 = vector.broadcast %264 : vector<16x1xf32> to vector<16x32xf32>
    %266 = arith.mulf %256, %265 : vector<16x32xf32>
    %267 = vector.broadcast %189 : vector<1x32xf32> to vector<16x32xf32>
    %268 = arith.mulf %266, %267 : vector<16x32xf32>
    %269 = vector.broadcast %191 : vector<1x32xf32> to vector<16x32xf32>
    %270 = arith.addf %268, %269 : vector<16x32xf32>
    %271 = arith.truncf %270 : vector<16x32xf32> to vector<16x32xbf16>
    %cst_117 = arith.constant dense<0.000000e+00> : vector<16x64xf32>
    %272 = tpu.matmul %271, %181, %cst_117 {dimension_numbers = #tpu.dot_dimension_numbers<[1], [0], [0], [1], [0, 0, 1, 1], [], []>} : vector<16x32xbf16>, vector<32x64xbf16>, vector<16x64xf32> -> vector<16x64xf32>
    %273 = vector.broadcast %193 : vector<1x64xf32> to vector<16x64xf32>
    %274 = arith.addf %272, %273 : vector<16x64xf32>
    %cst_118 = arith.constant 5.000000e-01 : f32
    %275 = vector.broadcast %cst_118 : f32 to vector<16x64xf32>
    %276 = arith.mulf %275, %274 : vector<16x64xf32>
    %cst_119 = arith.constant 4.471500e-02 : f32
    %277 = vector.broadcast %cst_119 : f32 to vector<16x64xf32>
    %278 = arith.mulf %277, %274 : vector<16x64xf32>
    %279 = arith.mulf %278, %274 : vector<16x64xf32>
    %280 = arith.mulf %279, %274 : vector<16x64xf32>
    %281 = arith.addf %274, %280 : vector<16x64xf32>
    %cst_120 = arith.constant 0.797884583 : f32
    %282 = vector.broadcast %cst_120 : f32 to vector<16x64xf32>
    %283 = arith.mulf %282, %281 : vector<16x64xf32>
    %284 = math.tanh %283 : vector<16x64xf32>
    %cst_121 = arith.constant 1.000000e+00 : f32
    %285 = vector.broadcast %cst_121 : f32 to vector<16x64xf32>
    %286 = arith.addf %285, %284 : vector<16x64xf32>
    %287 = arith.mulf %276, %286 : vector<16x64xf32>
    %288 = arith.truncf %287 : vector<16x64xf32> to vector<16x64xbf16>
    %cst_122 = arith.constant dense<0.000000e+00> : vector<16x32xf32>
    %289 = tpu.matmul %288, %183, %cst_122 {dimension_numbers = #tpu.dot_dimension_numbers<[1], [0], [0], [1], [0, 0, 1, 1], [], []>} : vector<16x64xbf16>, vector<64x32xbf16>, vector<16x32xf32> -> vector<16x32xf32>
    %290 = vector.broadcast %195 : vector<1x32xf32> to vector<16x32xf32>
    %291 = arith.addf %289, %290 : vector<16x32xf32>
    %292 = arith.addf %291, %270 : vector<16x32xf32>
    %cst_123 = arith.constant dense<0.000000e+00> : vector<16xf32>
    %293 = vector.multi_reduction <add>, %292, %cst_123 [1] : vector<16x32xf32> to vector<16xf32>
    %294 = vector.shape_cast %293 : vector<16xf32> to vector<16x1xf32>
    %cst_124 = arith.constant 3.200000e+01 : f32
    %295 = vector.broadcast %cst_124 : f32 to vector<16x1xf32>
    %296 = arith.divf %294, %295 : vector<16x1xf32>
    %297 = vector.broadcast %296 : vector<16x1xf32> to vector<16x32xf32>
    %298 = arith.subf %292, %297 : vector<16x32xf32>
    %299 = arith.mulf %298, %298 : vector<16x32xf32>
    %cst_125 = arith.constant dense<0.000000e+00> : vector<16xf32>
    %300 = vector.multi_reduction <add>, %299, %cst_125 [1] : vector<16x32xf32> to vector<16xf32>
    %301 = vector.shape_cast %300 : vector<16xf32> to vector<16x1xf32>
    %cst_126 = arith.constant 3.200000e+01 : f32
    %302 = vector.broadcast %cst_126 : f32 to vector<16x1xf32>
    %303 = arith.divf %301, %302 : vector<16x1xf32>
    %cst_127 = arith.constant 9.99999996E-13 : f32
    %304 = vector.broadcast %cst_127 : f32 to vector<16x1xf32>
    %305 = arith.addf %303, %304 : vector<16x1xf32>
    %306 = math.rsqrt %305 : vector<16x1xf32>
    %307 = vector.broadcast %306 : vector<16x1xf32> to vector<16x32xf32>
    %308 = arith.mulf %298, %307 : vector<16x32xf32>
    %309 = vector.broadcast %197 : vector<1x32xf32> to vector<16x32xf32>
    %310 = arith.mulf %308, %309 : vector<16x32xf32>
    %311 = vector.broadcast %199 : vector<1x32xf32> to vector<16x32xf32>
    %312 = arith.addf %310, %311 : vector<16x32xf32>
    %313 = vector.shape_cast %312 : vector<16x32xf32> to vector<2x8x32xf32>
    %314 = vector.extract_strided_slice %313 {offsets = [0, 0, 0], sizes = [2, 1, 32], strides = [1, 1, 1]} : vector<2x8x32xf32> to vector<2x1x32xf32>
    %315 = vector.shape_cast %314 : vector<2x1x32xf32> to vector<2x32xf32>
    %c0_128 = arith.constant 0 : index
    %c0_129 = arith.constant 0 : index
    %316 = vector.load %arg4[%c0_128, %c0_129] : memref<64x128xbf16, #tpu.memory_space<vmem>>, vector<32x32xbf16>
    %c32_130 = arith.constant 32 : index
    %c0_131 = arith.constant 0 : index
    %317 = vector.load %arg4[%c32_130, %c0_131] : memref<64x128xbf16, #tpu.memory_space<vmem>>, vector<32x128xbf16>
    %c2_132 = arith.constant 2 : index
    %c0_133 = arith.constant 0 : index
    %318 = vector.load %arg5[%c2_132, %c0_133] : memref<4x128xf32, #tpu.memory_space<vmem>>, vector<1x32xf32>
    %c3_134 = arith.constant 3 : index
    %c0_135 = arith.constant 0 : index
    %319 = vector.load %arg5[%c3_134, %c0_135] : memref<4x128xf32, #tpu.memory_space<vmem>>, vector<1x128xf32>
    %320 = arith.truncf %315 : vector<2x32xf32> to vector<2x32xbf16>
    %cst_136 = arith.constant dense<0.000000e+00> : vector<2x32xf32>
    %321 = tpu.matmul %320, %316, %cst_136 {dimension_numbers = #tpu.dot_dimension_numbers<[1], [0], [0], [1], [0, 0, 1, 1], [], []>} : vector<2x32xbf16>, vector<32x32xbf16>, vector<2x32xf32> -> vector<2x32xf32>
    %322 = vector.broadcast %318 : vector<1x32xf32> to vector<2x32xf32>
    %323 = arith.addf %321, %322 : vector<2x32xf32>
    %324 = math.tanh %323 : vector<2x32xf32>
    %325 = arith.truncf %324 : vector<2x32xf32> to vector<2x32xbf16>
    %cst_137 = arith.constant dense<0.000000e+00> : vector<2x128xf32>
    %326 = tpu.matmul %325, %317, %cst_137 {dimension_numbers = #tpu.dot_dimension_numbers<[1], [0], [0], [1], [0, 0, 1, 1], [], []>} : vector<2x32xbf16>, vector<32x128xbf16>, vector<2x128xf32> -> vector<2x128xf32>
    %327 = vector.broadcast %319 : vector<1x128xf32> to vector<2x128xf32>
    %328 = arith.addf %326, %327 : vector<2x128xf32>
    %c0_138 = arith.constant 0 : index
    %c0_139 = arith.constant 0 : index
    %329 = vector.load %arg6[%c0_138, %c0_139] : memref<2x128xf32, #tpu.memory_space<vmem>>, vector<2x128xf32>
    tpu.vector_store %arg6[%c0_138, %c0_139], %328 {strides = array<i32>} : memref<2x128xf32, #tpu.memory_space<vmem>>, vector<2x128xf32>,
    return
  }
}

</mosaic_0001>

<bundles_post_ra>
// kernel: bert_seq_ft_forward.1
= control target key start
LH: loop header
LB: loop body
LE: loop exit
PB: predicated region body
PF: predicated region fallthrough
CT: control target
= control target key end

     0   :  { %11 = vsyncpa [#allocation3], 0  ;;  %s3040_s0 = inlined_call_operand.vmem [shape: s32[16,1], index: 0, kind: input, shape index: {}]   ;;  %s3041_s1 = inlined_call_operand.vmem [shape: bf16[128,32], index: 1, kind: input, shape index: {}]   ;;  %s3042_s2 = inlined_call_operand.hbm [shape: bf16[2,160,128], index: 2, kind: input, shape index: {}]   ;;  %s3043_s3 = inlined_call_operand.vmem [shape: f32[2,8,128], index: 3, kind: input, shape index: {}]   ;;  %s3044_s4 = inlined_call_operand.vmem [shape: bf16[64,128], index: 4, kind: input, shape index: {}]   ;;  %s3045_s5 = inlined_call_operand.vmem [shape: f32[4,128], index: 5, kind: input, shape index: {}]   ;;  %s3046_s6 = inlined_call_operand.hbm [shape: f32[2,128], index: 6, kind: output, shape index: {}]  }
   0x1   :  { %12 = vsyncpa [#allocation4], 0  ;;  %s2583_s21 = smov [#allocation2]   ;;  %s2535_s25 = scalar_lea.hbm %s3042_s2, 2560 }
   0x2   :  { %s22_s22 = sshll.u32 %s2583_s21, 4  ;;  %p2536_p0 = scmp.ne.s32.totalorder %s3042_s2, %s2535_s25  ;;  %s23_s22 = int_to_ptr.vmem [resolvable:$true] %s22_s22 }
   0x3   :  { %p2539_p1 = scmp.lt.u32.totalorder %s2535_s25, %s3042_s2 }
   0x5   :  { %p2541_p2 = pnand %p2539_p1, %p2536_p0 }
   0x7   :  { %2544 = shalt.err (!%p2541_p2)
}
   0x8   :  { %s2545_s30 = scalar_lea.vmem %s23_s22, 2560  ;;  %p2550_p4 = scmp.lt.s32.totalorder %s23_s22, %s23_s22 }
   0x9   :  { %p2546_p3 = scmp.ne.s32.totalorder %s23_s22, %s2545_s30  ;;  %p2551_p5 = scmp.lt.s32.totalorder %s2545_s30, %s2545_s30 }
   0xb   :  { %p2552_p6 = por %p2551_p5, %p2550_p4 }
   0xd   :  { %p2553_p7 = pnand %p2552_p6, %p2546_p3 }
   0xf   :  { %2556 = shalt.err (!%p2553_p7)
}
  0x10   :  { %s2584_s7 = smov 64   ;;  %s2585_s8 = smov 4  }
  0x11   :  { %28 = dma.hbm_to_vmem [thread:$0]  %s3042_s2, 2560, %s23_s22, [#allocation3], %s2584_s7, %s2584_s7, %s2585_s8  }
  0x12   :  { %2579 = dma.done.wait [#allocation3], 2560  }
  0x13   :  { %2580 = vsyncadd [#allocation3], 4294964736  ;;  %v2586_v0 = vmov 0   ;;  %v2587_v1 = vmov 0.0   ;;  %v39_v2 = vld [vmem:[%s3040_s0] sm:$0xff]  ;;  %v40_v4 = vld [vmem:[%s3040_s0 + $0x8] sm:$0xff]  ;;  %v41_v12 = vlaneseq }
  0x14   :  { %2430 = vset.pattern.permute.xlu0 %v2586_v0  ;;  %2213 = vmatprep.subr.bf16.mxu0 %v2587_v1  ;;  %v2441_v3 = vld [vmem:[%s3041_s1] sm:$0xff]   ;;  %v2442_v5 = vld [vmem:[%s3041_s1 + $0x8] sm:$0xff]   ;;  %v2443_v6 = vld [vmem:[%s3041_s1 + $0x10] sm:$0xff]   ;;  %vm2588_vm0 = vmmov 0   ;;  %v2589_v22 = vmov 1.0|1.0  }
  0x15   :  { %2233 = vmatprep.subr.bf16.mxu1 %v2587_v1  ;;  %49 = vperm.xlu0 %2430, %v39_v2   ;;  %v2444_v7 = vld [vmem:[%s3041_s1 + $0x18] sm:$0xff]   ;;  %v2445_v8 = vld [vmem:[%s3041_s1 + $0x20] sm:$0xff]   ;;  %v2446_v9 = vld [vmem:[%s3041_s1 + $0x28] sm:$0xff]   ;;  %v44_v13 = vshrl.u32 %v41_v12, 7  ;;  %v42_v17 = vand.u32 127, %v41_v12  ;;  %vm172_vm8 = vcmask 261120  }
  0x16   :  { %2214 = vmatpush3.bf16.msra.mxu0 %v2441_v3  ;;  %2229 = vmatprep.mubr.msk.bf16.mxu0 %vm2588_vm0, %v2587_v1  ;;  %v2447_v10 = vld [vmem:[%s3041_s1 + $0x30] sm:$0xff]   ;;  %v2448_v11 = vld [vmem:[%s3041_s1 + $0x38] sm:$0xff]   ;;  %v2449_v39 = vld [vmem:[#allocation2] sm:$0xff]   ;;  %s2590_s11 = smov 96   ;;  %vm309_vm9 = vcmask 130048   ;;  %vm432_vm10 = vcmask 1043456  }
  0x17   :  { %2215 = vmatprep.subr.bf16.mxu0 %v2587_v1  ;;  %2237 = vmatprep.mubr.msk.bf16.mxu1 %vm2588_vm0, %v2587_v1  ;;  %v45_v14 = vadd.s32 8, %v44_v13  ;;  %v46_v15 = vand.u32 7, %v44_v13  ;;  %v2450_v40 = vld [vmem:[#allocation2 + $0x8] sm:$0xff]   ;;  %v2052_v49 = vld [vmem:[%s3045_s5] ss:$0 sm:$0xff]  ;;  %vm404_vm11 = vcmask 64512  }
  0x18   :  { %2234 = vmatpush3.bf16.msra.mxu1 %v2449_v39  ;;  %v2053_v53 = vld [vmem:[%s3045_s5 + $0x1] ss:$0 sm:$0xff]  ;;  %v2054_v58 = vld [vmem:[%s3043_s3] ss:$0 sm:$0xff]  ;;  %s2591_s12 = smov 80   ;;  %s2592_s13 = smov 112  }
  0x19   :  { %52 = vperm.xlu0 %2430, %v40_v4   ;;  %v47_v16 = vand.u32 7, %v45_v14  ;;  %v56_v18 = vadd.s32 100, %v46_v15  ;;  %2235 = vmatprep.subr.bf16.mxu1 %v2587_v1  ;;  %s2593_s14 = smov 48   ;;  %s2594_s15 = smov 16   ;;  %vm965_vm12 = vcmask 523264   ;;  %vm1907_vm13 = vcmask 1041409  }
  0x1a   :  { %2216 = vmatpush3.bf16.msra.mxu0 %v2442_v5 }
  0x1b   :  { %2217 = vmatprep.subr.bf16.mxu0 %v2587_v1  ;;  %v57_v19 = vadd.s32 100, %v47_v16  ;;  %vm58_vm1 = vcmp.eq.s32.totalorder %v42_v17, %v56_v18 }
  0x1c   :  { %2236 = vmatpush3.bf16.msra.mxu1 %v2450_v40 }
  0x1d   :  { %vm59_vm3 = vcmp.eq.s32.totalorder %v42_v17, %v57_v19  ;;  %2241 = vmatprep.subr.bf16.mxu1 %v2587_v1 }
  0x1e   :  { %2218 = vmatpush3.bf16.msra.mxu0 %v2443_v6 }
  0x1f   :  { %2219 = vmatprep.subr.bf16.mxu0 %v2587_v1 }
  0x22   :  { %2220 = vmatpush3.bf16.msra.mxu0 %v2444_v7 }
  0x23   :  { %2221 = vmatprep.subr.bf16.mxu0 %v2587_v1 }
  0x26   :  { %2222 = vmatpush3.bf16.msra.mxu0 %v2445_v8 }
  0x27   :  { %2223 = vmatprep.subr.bf16.mxu0 %v2587_v1 }
  0x2a   :  { %2224 = vmatpush3.bf16.msra.mxu0 %v2446_v9 }
  0x2b   :  { %2225 = vmatprep.subr.bf16.mxu0 %v2587_v1 }
  0x2e   :  { %2226 = vmatpush3.bf16.msra.mxu0 %v2447_v10 }
  0x2f   :  { %2227 = vmatprep.subr.bf16.mxu0 %v2587_v1 }
  0x32   :  { %2228 = vmatpush3.bf16.msra.mxu0 %v2448_v11 }
  0x33   :  { %2259 = vmatprep.subr.bf16.mxu0 %v2587_v1 }
  0x94   :  { %v50_v20 = vpop.permute.xlu0 %49 }
  0x95   :  { %vm54_vm2 = vcmp.eq.s32.totalorder %v42_v17, %v50_v20 }
  0x96   :  { %vm60_vm4 = vmor %vm54_vm2, %vm58_vm1 }
  0x98   :  { %v53_v21 = vpop.permute.xlu0 %52 }
  0x99   :  { %vm55_vm5 = vcmp.eq.s32.totalorder %v42_v17, %v53_v21 }
  0x9a   :  { %vm61_vm6 = vmor %vm55_vm5, %vm59_vm3 }
  0x9b   :  { %vm2050_vm7 = vmpackc.low %vm61_vm6, %vm60_vm4 }
  0x9c   :  { %2230 = vmatmul.mubr.msk.bf16.vlgmr.msra.gmra.mrb[0].mxu0 %vm2050_vm7, %v2589_v22 }
  0x9d   :  { %2261 = vmatprep.mubr.msk.bf16.mxu0 %vm2588_vm0, %v2587_v1 }
 0x16f   :  { %v163_v23 = vpop.f32.mrb[0].mxu0 }
 0x170   :  { %v2231_v24 = vpop.f32.mrb[1].mxu0  ;;  %v173_v25 = vsel %vm172_vm8, %v163_v23, 0.0 }
 0x171   :  { %174 = vadd.xlane.f32.xlu1 %v173_v25  ;;  %v166_v26 = vpop.f32.mrb[2].mxu0 }
 0x172   :  { %v2232_v27 = vpop.f32.mrb[3].mxu0  ;;  %v176_v28 = vsel %vm172_vm8, %v166_v26, 0.0 }
 0x175   :  { %177 = vadd.xlane.f32.xlu1 %v176_v28 }
 0x1fe   :  { %v175_v29 = vpop.xlane.xlu1 %174 }
 0x1ff   :  { %v180_v30 = vmul.f32 0.03125, %v175_v29 }
 0x201   :  { %v182_v31 = vsub.f32 %v163_v23, %v180_v30 }
 0x202   :  { %v178_v32 = vpop.xlane.xlu1 %177 }
 0x203   :  { %v181_v33 = vmul.f32 0.03125, %v178_v32  ;;  %v184_v34 = vmul.f32 %v182_v31, %v182_v31 }
 0x205   :  { %v183_v35 = vsub.f32 %v166_v26, %v181_v33  ;;  %v186_v36 = vsel %vm172_vm8, %v184_v34, 0.0 }
 0x206   :  { %187 = vadd.xlane.f32.xlu0 %v186_v36 }
 0x207   :  { %v185_v37 = vmul.f32 %v183_v35, %v183_v35 }
 0x209   :  { %v189_v38 = vsel %vm172_vm8, %v185_v37, 0.0 }
 0x20a   :  { %190 = vadd.xlane.f32.xlu1 %v189_v38 }
 0x293   :  { %v188_v41 = vpop.xlane.xlu0 %187 }
 0x294   :  { %v192_v42 = vmul.f32 0.03125, %v188_v41 }
 0x296   :  { %v194_v43 = vadd.f32 1e-12, %v192_v42 }
 0x297   :  { %v191_v44 = vpop.xlane.xlu1 %190 }
 0x298   :  { %2473 = vrsqrt.f32 %v194_v43  ;;  %v193_v45 = vmul.f32 0.03125, %v191_v44 }
 0x29a   :  { %v195_v46 = vadd.f32 1e-12, %v193_v45 }
 0x29c   :  { %2475 = vrsqrt.f32 %v195_v46 }
 0x2a2   :  { %v2474_v47 = vpop.eup %2473 }
 0x2a3   :  { %v198_v48 = vmul.f32 %v2474_v47, %v182_v31 }
 0x2a5   :  { %v204_v52 = vmul.f32 %v2052_v49, %v198_v48 }
 0x2a6   :  { %v2476_v50 = vpop.eup %2475 }
 0x2a7   :  { %v199_v51 = vmul.f32 %v2476_v50, %v183_v35  ;;  %v2703_v55 = vadd.f32 %v2053_v53, %v204_v52 }
 0x2a9   :  { %v205_v54 = vmul.f32 %v2052_v49, %v199_v51 }
 0x2ab   :  { %v2705_v56 = vadd.f32 %v2053_v53, %v205_v54 }
 0x2ad   :  { %v240_v57 = vpack.c.bf16 %v2705_v56, %v2703_v55 }
 0x2af   :  { %2238 = vmatmul.mubr.msk.bf16.vlgmr.msra.gmra.mrb[0].mxu1 %vm172_vm8, %v240_v57 }
 0x2b0   :  { %2243 = vmatprep.mubr.msk.bf16.mxu1 %vm2588_vm0, %v2587_v1 }
 0x382   :  { %v294_v59 = vpop.f32.mrb[0].mxu1 }
 0x383   :  { %v295_v60 = vadd.f32 %v2054_v58, %v294_v59  ;;  %v2239_v61 = vpop.f32.mrb[1].mxu1 }
 0x384   :  { %v297_v62 = vpop.f32.mrb[2].mxu1 }
 0x385   :  { %v2715_v63 = vpack.c.bf16 %v295_v60, %v295_v60  ;;  %v298_v0 = vadd.f32 %v2054_v58, %v297_v62  ;;  %v2240_v2 = vpop.f32.mrb[3].mxu1 }
 0x387   :  { %427 = vrot.lane.b32.xlu0 %v2715_v63, %s2584_s7  ;;  %307 = vrot.lane.b32.xlu1 %v2715_v63, %s2590_s11  ;;  %v2721_v3 = vpack.c.bf16 %v298_v0, %v298_v0 }
 0x38b   :  { %476 = vrot.lane.b32.xlu0 %v2721_v3, %s2584_s7  ;;  %356 = vrot.lane.b32.xlu1 %v2721_v3, %s2590_s11 }
 0x3f9   :  { %v428_v4 = vpop.permute.xlu0 %427  ;;  %v308_v5 = vpop.permute.xlu1 %307 }
 0x3fa   :  { %v314_v6 = vsel %vm309_vm9, %v308_v5, 0  ;;  %v434_v11 = vsel %vm432_vm10, %v428_v4, 0 }
 0x3fb   :  { %2242 = vmatpush3.bf16.xpose.msra.mxu1 %v314_v6 }
 0x3fc   :  { %2247 = vmatprep.subr.bf16.mxu1 %v2587_v1 }
 0x3fd   :  { %v477_v7 = vpop.permute.xlu0 %476  ;;  %v357_v9 = vpop.permute.xlu1 %356 }
 0x3fe   :  { %v482_v8 = vsel %vm432_vm10, %v477_v7, 0  ;;  %v362_v10 = vsel %vm309_vm9, %v357_v9, 0 }
 0x3ff   :  { %2260 = vmatpush3.bf16.msra.mxu0 %v482_v8 }
 0x400   :  { %2271 = vmatprep.subr.bf16.mxu0 %v2587_v1 }
 0x402   :  { %2244 = vmatmul.mubr.msk.bf16.vlgmr.msra.gmra.mrb[4].mxu1 %vm309_vm9, %v2715_v63 }
 0x403   :  { %2248 = vmatpush3.bf16.xpose.msra.mxu1 %v362_v10  ;;  %2249 = vmatprep.mubr.msk.bf16.mxu1 %vm2588_vm0, %v2587_v1 }
 0x404   :  { %2253 = vmatprep.subr.bf16.mxu1 %v2587_v1 }
 0x40a   :  { %2250 = vmatmul.mubr.msk.bf16.vlgmr.msra.gmra.mrb[8].mxu1 %vm309_vm9, %v2721_v3 }
 0x40b   :  { %2254 = vmatpush3.bf16.msra.mxu1 %v434_v11  ;;  %2255 = vmatprep.mubr.msk.bf16.mxu1 %vm2588_vm0, %v2587_v1 }
 0x40c   :  { %2265 = vmatprep.subr.bf16.mxu1 %v2587_v1 }
 0x4d5   :  { %v350_v12 = vpop.f32.mrb[4].mxu1 }
 0x4d6   :  { %v2245_v13 = vpop.f32.mrb[5].mxu1  ;;  %v405_v14 = vsel %vm404_vm11, %v350_v12, -inf }
 0x4d7   :  { %406 = vmax.xlane.f32.xlu1 %v405_v14  ;;  %v353_v15 = vpop.f32.mrb[6].mxu1  ;;  %v2451_v13 = vld [vmem:[#allocation2 + $0x10] sm:$0xff]  }
 0x4d8   :  { %v2246_v16 = vpop.f32.mrb[7].mxu1 }
 0x4dd   :  { %v398_v17 = vpop.f32.mrb[8].mxu1 }
 0x4de   :  { %v2251_v18 = vpop.f32.mrb[9].mxu1  ;;  %v408_v19 = vsel %vm404_vm11, %v398_v17, -inf }
 0x4df   :  { %409 = vmax.xlane.f32.xlu0 %v408_v19  ;;  %v401_v20 = vpop.f32.mrb[10].mxu1  ;;  %v2452_v18 = vld [vmem:[#allocation2 + $0x18] sm:$0xff]  }
 0x4e0   :  { %v2252_v21 = vpop.f32.mrb[11].mxu1 }
 0x4e8   :  { %578 = vrot.lane.b32.xlu1 %v2721_v3, %s2591_s12 }
 0x4f5   :  { %528 = vrot.lane.b32.xlu0 %v2715_v63, %s2591_s12 }
 0x4f9   :  { %526 = vrot.lane.b32.xlu0 %v2715_v63, %s2592_s13 }
 0x4fd   :  { %576 = vrot.lane.b32.xlu0 %v2721_v3, %s2592_s13 }
 0x564   :  { %v407_v22 = vpop.xlane.xlu1 %406 }
 0x565   :  { %v411_v23 = vsub.f32 %v350_v12, %v407_v22 }
 0x567   :  { %v413_v24 = vmul.f32 1.442695, %v411_v23 }
 0x568   :  { %v579_v33 = vpop.permute.xlu1 %578 }
 0x569   :  { %2477 = vpow2.f32 %v413_v24  ;;  %v584_v36 = vsel %vm309_vm9, %v579_v33, 0 }
 0x56c   :  { %v410_v25 = vpop.xlane.xlu0 %409 }
 0x56d   :  { %v412_v26 = vsub.f32 %v398_v17, %v410_v25 }
 0x56f   :  { %v415_v27 = vmul.f32 1.442695, %v412_v26 }
 0x570   :  { %v529_v29 = vpop.permute.xlu0 %528 }
 0x571   :  { %2479 = vpow2.f32 %v415_v27  ;;  %v534_v31 = vsel %vm309_vm9, %v529_v29, 0 }
 0x573   :  { %v2753_v28 = vpop.eup %2477 }
 0x574   :  { %v425_v30 = vpack.c.bf16 %v2753_v28, %v2753_v28  ;;  %v527_v35 = vpop.permute.xlu0 %526  ;;  %v417_v8 = vsel %vm404_vm11, %v2753_v28, 0.0 }
 0x576   :  { %2256 = vmatmul.mubr.msk.bf16.vlgmr.msra.gmra.mrb[12].mxu1 %vm404_vm11, %v425_v30 }
 0x577   :  { %2266 = vmatpush3.bf16.xpose.msra.mxu1 %v534_v31  ;;  %2267 = vmatprep.mubr.msk.bf16.mxu1 %vm2588_vm0, %v2587_v1 }
 0x578   :  { %2277 = vmatprep.subr.bf16.mxu1 %v2587_v1  ;;  %v577_v37 = vpop.permute.xlu0 %576 }
 0x57b   :  { %v2480_v32 = vpop.eup %2479 }
 0x57c   :  { %v426_v34 = vpack.c.bf16 %v2480_v32, %v2480_v32  ;;  %v420_v10 = vsel %vm404_vm11, %v2480_v32, 0.0 }
 0x57e   :  { %2262 = vmatmul.mubr.msk.bf16.vlgmr.msra.gmra.mrb[4].mxu0 %vm404_vm11, %v426_v34  ;;  %2268 = vmatmul.mubr.msk.bf16.vlgmr.msra.gmra.mrb[16].mxu1 %vm309_vm9, %v527_v35 }
 0x57f   :  { %2272 = vmatpush3.bf16.xpose.msra.mxu0 %v584_v36  ;;  %2273 = vmatprep.mubr.msk.bf16.mxu0 %vm2588_vm0, %v2587_v1 }
 0x580   :  { %2283 = vmatprep.subr.bf16.mxu0 %v2587_v1  ;;  %2279 = vmatprep.mubr.msk.bf16.mxu1 %vm2588_vm0, %v2587_v1 }
 0x586   :  { %2274 = vmatmul.mubr.msk.bf16.vlgmr.msra.gmra.mrb[8].mxu0 %vm309_vm9, %v577_v37 }
 0x587   :  { %2285 = vmatprep.mubr.msk.bf16.mxu0 %vm2588_vm0, %v2587_v1 }
 0x649   :  { %v2773_v38 = vpop.f32.mrb[12].mxu1 }
 0x64a   :  { %v2257_v39 = vpop.f32.mrb[13].mxu1 }
 0x64b   :  { %v473_v40 = vpop.f32.mrb[14].mxu1 }
 0x64c   :  { %v2258_v41 = vpop.f32.mrb[15].mxu1 }
 0x651   :  { %v2775_v42 = vpop.f32.mrb[4].mxu0  ;;  %v570_v43 = vpop.f32.mrb[16].mxu1 }
 0x652   :  { %v2263_v44 = vpop.f32.mrb[5].mxu0  ;;  %v2269_v45 = vpop.f32.mrb[17].mxu1  ;;  %v626_v46 = vsel %vm404_vm11, %v570_v43, -inf }
 0x653   :  { %627 = vmax.xlane.f32.xlu0 %v626_v46  ;;  %v521_v47 = vpop.f32.mrb[6].mxu0  ;;  %v573_v48 = vpop.f32.mrb[18].mxu1  ;;  %v2068_v44 = vld [vmem:[%s3043_s3 + $0x1] ss:$0 sm:$0xff] }
 0x654   :  { %v2264_v49 = vpop.f32.mrb[7].mxu0  ;;  %v2270_v50 = vpop.f32.mrb[19].mxu1 }
 0x659   :  { %v620_v51 = vpop.f32.mrb[8].mxu0 }
 0x65a   :  { %v2275_v52 = vpop.f32.mrb[9].mxu0  ;;  %v629_v53 = vsel %vm404_vm11, %v620_v51, -inf }
 0x65b   :  { %630 = vmax.xlane.f32.xlu1 %v629_v53  ;;  %v623_v54 = vpop.f32.mrb[10].mxu0 }
 0x65c   :  { %v2276_v57 = vpop.f32.mrb[11].mxu0 }
 0x669   :  { %648 = vrot.lane.b32.xlu0 %v2715_v63, %s2593_s14 }
 0x66c   :  { %696 = vrot.lane.b32.xlu1 %v2721_v3, %s2593_s14 }
 0x6e0   :  { %v628_v58 = vpop.xlane.xlu0 %627 }
 0x6e1   :  { %v632_v59 = vsub.f32 %v570_v43, %v628_v58 }
 0x6e3   :  { %v634_v60 = vmul.f32 1.442695, %v632_v59 }
 0x6e4   :  { %v649_v61 = vpop.permute.xlu0 %648 }
 0x6e5   :  { %2481 = vpow2.f32 %v634_v60  ;;  %v654_v62 = vsel %vm432_vm10, %v649_v61, 0 }
 0x6e6   :  { %2278 = vmatpush3.bf16.msra.mxu1 %v654_v62 }
 0x6e7   :  { %2289 = vmatprep.subr.bf16.mxu1 %v2587_v1 }
 0x6e8   :  { %v631_v0 = vpop.xlane.xlu1 %630 }
 0x6e9   :  { %v633_v2 = vsub.f32 %v620_v51, %v631_v0 }
 0x6eb   :  { %v636_v4 = vmul.f32 1.442695, %v633_v2  ;;  %v2453_v2 = vld [vmem:[#allocation2 + $0x20] sm:$0xff]  }
 0x6ec   :  { %v697_v5 = vpop.permute.xlu1 %696 }
 0x6ed   :  { %2483 = vpow2.f32 %v636_v4  ;;  %v702_v63 = vsel %vm432_vm10, %v697_v5, 0 }
 0x6ee   :  { %2284 = vmatpush3.bf16.msra.mxu0 %v702_v63 }
 0x6ef   :  { %v2482_v6 = vpop.eup %2481  ;;  %2297 = vmatprep.subr.bf16.mxu0 %v2587_v1 }
 0x6f0   :  { %v638_v3 = vsel %vm404_vm11, %v2482_v6, 0.0  ;;  %v646_v7 = vpack.c.bf16 %v2482_v6, %v2482_v6 }
 0x6f1   :  { %639 = vadd.xlane.f32.xlu0 %v638_v3 }
 0x6f2   :  { %2280 = vmatmul.mubr.msk.bf16.vlgmr.msra.gmra.mrb[20].mxu1 %vm404_vm11, %v646_v7 }
 0x6f3   :  { %2293 = vmatprep.mubr.msk.bf16.mxu1 %vm2588_vm0, %v2587_v1  ;;  %2290 = vmatpush3.bf16.msra.mxu1 %v2451_v13 }
 0x6f4   :  { %2291 = vmatprep.subr.bf16.mxu1 %v2587_v1 }
 0x6f5   :  { %418 = vadd.xlane.f32.xlu0 %v417_v8 }
 0x6f7   :  { %v2484_v9 = vpop.eup %2483  ;;  %2292 = vmatpush3.bf16.msra.mxu1 %v2452_v18 }
 0x6f8   :  { %v641_v11 = vsel %vm404_vm11, %v2484_v9, 0.0  ;;  %v647_v12 = vpack.c.bf16 %v2484_v9, %v2484_v9  ;;  %2305 = vmatprep.subr.bf16.mxu1 %v2587_v1 }
 0x6f9   :  { %421 = vadd.xlane.f32.xlu0 %v420_v10  ;;  %642 = vadd.xlane.f32.xlu1 %v641_v11  ;;  %v2072_v10 = vld [vmem:[%s3043_s3 + $0x2] ss:$0 sm:$0xff] }
 0x6fa   :  { %2286 = vmatmul.mubr.msk.bf16.vlgmr.msra.gmra.mrb[12].mxu0 %vm404_vm11, %v647_v12 }
 0x6fb   :  { %2301 = vmatprep.mubr.msk.bf16.mxu0 %vm2588_vm0, %v2587_v1  ;;  %2298 = vmatpush3.bf16.msra.mxu0 %v2453_v2 }
 0x6fc   :  { %2299 = vmatprep.subr.bf16.mxu0 %v2587_v1 }
 0x77e   :  { %v640_v14 = vpop.xlane.xlu0 %639 }
 0x77f   :  { %2485 = vrcp.f32 %v640_v14  ;;  %v2073_v14 = vld [vmem:[%s3043_s3 + $0x3] ss:$0 sm:$0xff] }
 0x782   :  { %v419_v30 = vpop.xlane.xlu0 %418 }
 0x786   :  { %v643_v15 = vpop.xlane.xlu1 %642  ;;  %v422_v31 = vpop.xlane.xlu0 %421 }
 0x787   :  { %2487 = vrcp.f32 %v643_v15 }
 0x788   :  { %2489 = vrcp.f32 %v419_v30 }
 0x789   :  { %v2486_v21 = vpop.eup %2485  ;;  %2491 = vrcp.f32 %v422_v31 }
 0x791   :  { %v2488_v22 = vpop.eup %2487 }
 0x792   :  { %v2490_v32 = vpop.eup %2489 }
 0x793   :  { %v2492_v33 = vpop.eup %2491  ;;  %v524_v35 = vmul.f32 %v2490_v32, %v2773_v38 }
 0x794   :  { %v525_v36 = vmul.f32 %v2492_v33, %v2775_v42 }
 0x7c5   :  { %v690_v16 = vpop.f32.mrb[20].mxu1 }
 0x7c6   :  { %v2281_v17 = vpop.f32.mrb[21].mxu1  ;;  %v744_v24 = vmul.f32 %v2486_v21, %v690_v16  ;;  %v2457_v21 = vld [vmem:[#allocation2 + $0x40] sm:$0xff]  }
 0x7c7   :  { %v693_v19 = vpop.f32.mrb[22].mxu1 }
 0x7c8   :  { %v2282_v20 = vpop.f32.mrb[23].mxu1  ;;  %v2455_v19 = vld [vmem:[#allocation2 + $0x30] sm:$0xff]  }
 0x7c9   :  { %v2456_v20 = vld [vmem:[#allocation2 + $0x38] sm:$0xff]  }
 0x7cd   :  { %v738_v23 = vpop.f32.mrb[12].mxu0 }
 0x7ce   :  { %v745_v25 = vmul.f32 %v2488_v22, %v738_v23  ;;  %v2287_v26 = vpop.f32.mrb[13].mxu0  ;;  %v2458_v22 = vld [vmem:[#allocation2 + $0x48] sm:$0xff]   ;;  %v2074_v23 = vld [vmem:[%s3043_s3 + $0x4] ss:$0 sm:$0xff] }
 0x7cf   :  { %v741_v27 = vpop.f32.mrb[14].mxu0 }
 0x7d0   :  { %v2431_v28 = vpack.i.bf16 %v745_v25, %v744_v24  ;;  %v2288_v29 = vpop.f32.mrb[15].mxu0 }
 0x7d2   :  { %2432 = vrot.lane.b32.xlu0 %v2431_v28, %s2594_s15 }
 0x844   :  { %v2433_v34 = vpop.permute.xlu0 %2432 }
 0x845   :  { %v2435_v37 = vunpack.i.h.bf16 %v2433_v34  ;;  %v2434_v39 = vunpack.i.l.bf16 %v2433_v34 }
 0x847   :  { %v755_v40 = vsel %vm309_vm9, %v525_v36, %v2435_v37  ;;  %v754_v41 = vsel %vm309_vm9, %v524_v35, %v2434_v39 }
 0x848   :  { %v756_v43 = vpack.c.bf16 %v755_v40, %v754_v41 }
 0x84a   :  { %2294 = vmatmul.mubr.msk.bf16.vlgmr.msra.gmra.mrb[24].mxu1 %vm172_vm8, %v756_v43 }
 0x84b   :  { %2313 = vmatprep.mubr.msk.bf16.mxu1 %vm2588_vm0, %v2587_v1  ;;  %2306 = vmatpush3.bf16.msra.mxu1 %v2455_v19 }
 0x84c   :  { %2307 = vmatprep.subr.bf16.mxu1 %v2587_v1 }
 0x84f   :  { %2308 = vmatpush3.bf16.msra.mxu1 %v2456_v20 }
 0x850   :  { %2309 = vmatprep.subr.bf16.mxu1 %v2587_v1 }
 0x853   :  { %2310 = vmatpush3.bf16.msra.mxu1 %v2457_v21  ;;  %v2085_v21 = vld [vmem:[%s3043_s3 + $0x7] ss:$0 sm:$0xff] }
 0x854   :  { %2311 = vmatprep.subr.bf16.mxu1 %v2587_v1 }
 0x857   :  { %2312 = vmatpush3.bf16.msra.mxu1 %v2458_v22 }
 0x858   :  { %2331 = vmatprep.subr.bf16.mxu1 %v2587_v1 }
 0x91d   :  { %v810_v45 = vpop.f32.mrb[24].mxu1 }
 0x91e   :  { %v811_v38 = vadd.f32 %v2068_v44, %v810_v45  ;;  %v2295_v46 = vpop.f32.mrb[25].mxu1 }
 0x91f   :  { %v813_v42 = vpop.f32.mrb[26].mxu1 }
 0x920   :  { %v814_v47 = vadd.f32 %v2068_v44, %v813_v42  ;;  %v2296_v48 = vpop.f32.mrb[27].mxu1  ;;  %v817_v49 = vadd.f32 %v811_v38, %v2703_v55 }
 0x922   :  { %v819_v50 = vsel %vm172_vm8, %v817_v49, 0.0  ;;  %v818_v51 = vadd.f32 %v814_v47, %v2705_v56  ;;  %v2454_v56 = vld [vmem:[#allocation2 + $0x28] sm:$0xff]  }
 0x923   :  { %820 = vadd.xlane.f32.xlu1 %v819_v50  ;;  %2300 = vmatpush3.bf16.msra.mxu0 %v2454_v56 }
 0x924   :  { %v822_v52 = vsel %vm172_vm8, %v818_v51, 0.0  ;;  %2317 = vmatprep.subr.bf16.mxu0 %v2587_v1 }
 0x927   :  { %823 = vadd.xlane.f32.xlu1 %v822_v52 }
 0x9b0   :  { %v821_v53 = vpop.xlane.xlu1 %820 }
 0x9b1   :  { %v825_v54 = vmul.f32 0.03125, %v821_v53 }
 0x9b3   :  { %v827_v57 = vsub.f32 %v817_v49, %v825_v54  ;;  %v2078_v49 = vld [vmem:[%s3043_s3 + $0x5] ss:$0 sm:$0xff] }
 0x9b4   :  { %v824_v58 = vpop.xlane.xlu1 %823 }
 0x9b5   :  { %v826_v59 = vmul.f32 0.03125, %v824_v58  ;;  %v829_v60 = vmul.f32 %v827_v57, %v827_v57 }
 0x9b7   :  { %v828_v61 = vsub.f32 %v818_v51, %v826_v59  ;;  %v831_v62 = vsel %vm172_vm8, %v829_v60, 0.0 }
 0x9b8   :  { %832 = vadd.xlane.f32.xlu1 %v831_v62 }
 0x9b9   :  { %v830_v0 = vmul.f32 %v828_v61, %v828_v61 }
 0x9bb   :  { %v834_v55 = vsel %vm172_vm8, %v830_v0, 0.0 }
 0x9bc   :  { %835 = vadd.xlane.f32.xlu1 %v834_v55 }
 0xa45   :  { %v833_v4 = vpop.xlane.xlu1 %832 }
 0xa46   :  { %v837_v5 = vmul.f32 0.03125, %v833_v4 }
 0xa48   :  { %v839_v63 = vadd.f32 1e-12, %v837_v5 }
 0xa49   :  { %v836_v6 = vpop.xlane.xlu1 %835 }
 0xa4a   :  { %2493 = vrsqrt.f32 %v839_v63  ;;  %v838_v3 = vmul.f32 0.03125, %v836_v6 }
 0xa4c   :  { %v840_v7 = vadd.f32 1e-12, %v838_v3 }
 0xa4e   :  { %2495 = vrsqrt.f32 %v840_v7  ;;  %v2459_v7 = vld [vmem:[#allocation2 + $0x50] sm:$0xff]  }
 0xa54   :  { %v2494_v8 = vpop.eup %2493 }
 0xa55   :  { %v843_v9 = vmul.f32 %v2494_v8, %v827_v57  ;;  %v2460_v8 = vld [vmem:[#allocation2 + $0x58] sm:$0xff]  }
 0xa57   :  { %v849_v12 = vmul.f32 %v2072_v10, %v843_v9 }
 0xa58   :  { %v2496_v11 = vpop.eup %2495 }
 0xa59   :  { %v844_v13 = vmul.f32 %v2496_v11, %v828_v61  ;;  %v855_v16 = vadd.f32 %v2073_v14, %v849_v12 }
 0xa5b   :  { %v850_v15 = vmul.f32 %v2072_v10, %v844_v13 }
 0xa5d   :  { %v856_v17 = vadd.f32 %v2073_v14, %v850_v15 }
 0xa5f   :  { %v857_v18 = vpack.c.bf16 %v856_v17, %v855_v16 }
 0xa61   :  { %2302 = vmatmul.mubr.msk.bf16.vlgmr.msra.gmra.mrb[16].mxu0 %vm172_vm8, %v857_v18 }
 0xa62   :  { %2321 = vmatprep.mubr.msk.bf16.mxu0 %vm2588_vm0, %v2587_v1  ;;  %2318 = vmatpush3.bf16.msra.mxu0 %v2459_v7 }
 0xa63   :  { %2319 = vmatprep.subr.bf16.mxu0 %v2587_v1 }
 0xa66   :  { %2320 = vmatpush3.bf16.msra.mxu0 %v2460_v8 }
 0xa67   :  { %2325 = vmatprep.subr.bf16.mxu0 %v2587_v1 }
 0xb34   :  { %v911_v24 = vpop.f32.mrb[16].mxu0 }
 0xb35   :  { %v912_v25 = vadd.f32 %v2074_v23, %v911_v24  ;;  %v2303_v26 = vpop.f32.mrb[17].mxu0 }
 0xb36   :  { %v914_v27 = vpop.f32.mrb[18].mxu0  ;;  %v2094_v26 = vld [vmem:[%s3043_s3 + $0x8] ss:$0 sm:$0xff] }
 0xb37   :  { %v920_v28 = vmul.f32 0.044715, %v912_v25  ;;  %v915_v29 = vadd.f32 %v2074_v23, %v914_v27  ;;  %v2304_v30 = vpop.f32.mrb[19].mxu0  ;;  %v918_v45 = vmul.f32 0.5, %v912_v25 }
 0xb39   :  { %v922_v31 = vmul.f32 %v920_v28, %v912_v25  ;;  %v921_v32 = vmul.f32 0.044715, %v915_v29  ;;  %v919_v38 = vmul.f32 0.5, %v915_v29 }
 0xb3b   :  { %v924_v33 = vmul.f32 %v922_v31, %v912_v25  ;;  %v923_v34 = vmul.f32 %v921_v32, %v915_v29 }
 0xb3d   :  { %v926_v35 = vadd.f32 %v924_v33, %v912_v25  ;;  %v925_v36 = vmul.f32 %v923_v34, %v915_v29 }
 0xb3f   :  { %v928_v37 = vmul.f32 0.7978846, %v926_v35  ;;  %v927_v39 = vadd.f32 %v925_v36, %v915_v29 }
 0xb41   :  { %2497 = vtanh.f32 %v928_v37  ;;  %v929_v40 = vmul.f32 0.7978846, %v927_v39 }
 0xb43   :  { %2499 = vtanh.f32 %v929_v40 }
 0xb4b   :  { %v2498_v41 = vpop.eup %2497 }
 0xb4c   :  { %v932_v43 = vadd.f32 1.0, %v2498_v41 }
 0xb4d   :  { %v2500_v44 = vpop.eup %2499 }
 0xb4e   :  { %v933_v46 = vadd.f32 1.0, %v2500_v44  ;;  %v934_v42 = vmul.f32 %v932_v43, %v918_v45 }
 0xb50   :  { %v935_v47 = vmul.f32 %v933_v46, %v919_v38 }
 0xb52   :  { %v936_v48 = vpack.c.bf16 %v935_v47, %v934_v42 }
 0xb54   :  { %2314 = vmatmul.mubr.msk.bf16.vlgmr.msra.gmra.mrb[28].mxu1 %vm965_vm12, %v936_v48 }
 0xb55   :  { %2333 = vmatprep.mubr.msk.bf16.mxu1 %vm2588_vm0, %v2587_v1 }
 0xc27   :  { %v1003_v50 = vpop.f32.mrb[28].mxu1 }
 0xc28   :  { %v1004_v51 = vadd.f32 %v2078_v49, %v1003_v50  ;;  %v2315_v52 = vpop.f32.mrb[29].mxu1 }
 0xc29   :  { %v1006_v53 = vpop.f32.mrb[30].mxu1 }
 0xc2a   :  { %v1007_v54 = vadd.f32 %v2078_v49, %v1006_v53  ;;  %v2316_v57 = vpop.f32.mrb[31].mxu1  ;;  %v1010_v58 = vadd.f32 %v1004_v51, %v855_v16 }
 0xc2c   :  { %v1012_v59 = vsel %vm172_vm8, %v1010_v58, 0.0  ;;  %v1011_v60 = vadd.f32 %v1007_v54, %v856_v17  ;;  %v2084_v17 = vld [vmem:[%s3043_s3 + $0x6] ss:$0 sm:$0xff] }
 0xc2d   :  { %1013 = vadd.xlane.f32.xlu1 %v1012_v59 }
 0xc2e   :  { %v1015_v61 = vsel %vm172_vm8, %v1011_v60, 0.0 }
 0xc2f   :  { %1016 = vadd.xlane.f32.xlu0 %v1015_v61 }
 0xcba   :  { %v1014_v62 = vpop.xlane.xlu1 %1013 }
 0xcbb   :  { %v1018_v0 = vmul.f32 0.03125, %v1014_v62 }
 0xcbc   :  { %v1017_v55 = vpop.xlane.xlu0 %1016 }
 0xcbd   :  { %v1020_v2 = vsub.f32 %v1010_v58, %v1018_v0  ;;  %v1019_v56 = vmul.f32 0.03125, %v1017_v55 }
 0xcbf   :  { %v1021_v4 = vsub.f32 %v1011_v60, %v1019_v56  ;;  %v1022_v5 = vmul.f32 %v1020_v2, %v1020_v2 }
 0xcc1   :  { %v1024_v63 = vsel %vm172_vm8, %v1022_v5, 0.0  ;;  %v1023_v6 = vmul.f32 %v1021_v4, %v1021_v4 }
 0xcc2   :  { %1025 = vadd.xlane.f32.xlu1 %v1024_v63 }
 0xcc3   :  { %v1027_v3 = vsel %vm172_vm8, %v1023_v6, 0.0 }
 0xcc6   :  { %1028 = vadd.xlane.f32.xlu1 %v1027_v3 }
 0xd4f   :  { %v1026_v9 = vpop.xlane.xlu1 %1025 }
 0xd50   :  { %v1030_v10 = vmul.f32 0.03125, %v1026_v9 }
 0xd52   :  { %v1032_v11 = vadd.f32 1e-12, %v1030_v10 }
 0xd53   :  { %v1029_v12 = vpop.xlane.xlu1 %1028 }
 0xd54   :  { %2501 = vrsqrt.f32 %v1032_v11  ;;  %v1031_v13 = vmul.f32 0.03125, %v1029_v12 }
 0xd56   :  { %v1033_v14 = vadd.f32 1e-12, %v1031_v13 }
 0xd58   :  { %2503 = vrsqrt.f32 %v1033_v14 }
 0xd5e   :  { %v2502_v15 = vpop.eup %2501 }
 0xd5f   :  { %v1036_v16 = vmul.f32 %v2502_v15, %v1020_v2 }
 0xd61   :  { %v1042_v19 = vmul.f32 %v2084_v17, %v1036_v16 }
 0xd62   :  { %v2504_v18 = vpop.eup %2503 }
 0xd63   :  { %v1037_v20 = vmul.f32 %v2504_v18, %v1021_v4  ;;  %v2853_v23 = vadd.f32 %v2085_v21, %v1042_v19 }
 0xd65   :  { %v1043_v22 = vmul.f32 %v2084_v17, %v1037_v20 }
 0xd67   :  { %v2855_v24 = vadd.f32 %v2085_v21, %v1043_v22 }
 0xd69   :  { %v1080_v25 = vpack.c.bf16 %v2855_v24, %v2853_v23 }
 0xd6b   :  { %2322 = vmatmul.mubr.msk.bf16.vlgmr.msra.gmra.mrb[20].mxu0 %vm172_vm8, %v1080_v25 }
 0xd6c   :  { %2327 = vmatprep.mubr.msk.bf16.mxu0 %vm2588_vm0, %v2587_v1 }
 0xe3e   :  { %v1134_v27 = vpop.f32.mrb[20].mxu0 }
 0xe3f   :  { %v1135_v28 = vadd.f32 %v2094_v26, %v1134_v27  ;;  %v2323_v29 = vpop.f32.mrb[21].mxu0 }
 0xe40   :  { %v1137_v30 = vpop.f32.mrb[22].mxu0 }
 0xe41   :  { %v2865_v31 = vpack.c.bf16 %v1135_v28, %v1135_v28  ;;  %v1138_v32 = vadd.f32 %v2094_v26, %v1137_v30  ;;  %v2324_v33 = vpop.f32.mrb[23].mxu0 }
 0xe43   :  { %1265 = vrot.lane.b32.xlu0 %v2865_v31, %s2584_s7  ;;  %1147 = vrot.lane.b32.xlu1 %v2865_v31, %s2590_s11  ;;  %v2871_v34 = vpack.c.bf16 %v1138_v32, %v1138_v32 }
 0xe47   :  { %1313 = vrot.lane.b32.xlu0 %v2871_v34, %s2584_s7  ;;  %1195 = vrot.lane.b32.xlu1 %v2871_v34, %s2590_s11 }
 0xe4b   :  { %1365 = vrot.lane.b32.xlu0 %v2865_v31, %s2591_s12 }
 0xeb5   :  { %v1148_v35 = vpop.permute.xlu1 %1147  ;;  %v1266_v37 = vpop.permute.xlu0 %1265 }
 0xeb6   :  { %v1153_v36 = vsel %vm309_vm9, %v1148_v35, 0  ;;  %v1271_v41 = vsel %vm432_vm10, %v1266_v37, 0 }
 0xeb7   :  { %2326 = vmatpush3.bf16.xpose.msra.mxu0 %v1153_v36 }
 0xeb8   :  { %2337 = vmatprep.subr.bf16.mxu0 %v2587_v1 }
 0xeb9   :  { %v1196_v39 = vpop.permute.xlu1 %1195  ;;  %v1314_v43 = vpop.permute.xlu0 %1313 }
 0xeba   :  { %v1201_v40 = vsel %vm309_vm9, %v1196_v39, 0  ;;  %v1319_v44 = vsel %vm432_vm10, %v1314_v43, 0 }
 0xebb   :  { %2332 = vmatpush3.bf16.xpose.msra.mxu1 %v1201_v40 }
 0xebc   :  { %2343 = vmatprep.subr.bf16.mxu1 %v2587_v1 }
 0xebd   :  { %v1366_v53 = vpop.permute.xlu0 %1365 }
 0xebe   :  { %2328 = vmatmul.mubr.msk.bf16.vlgmr.msra.gmra.mrb[24].mxu0 %vm309_vm9, %v2865_v31  ;;  %v1371_v55 = vsel %vm309_vm9, %v1366_v53, 0 }
 0xebf   :  { %2338 = vmatpush3.bf16.msra.mxu0 %v1271_v41  ;;  %2339 = vmatprep.mubr.msk.bf16.mxu0 %vm2588_vm0, %v2587_v1 }
 0xec0   :  { %2349 = vmatprep.subr.bf16.mxu0 %v2587_v1 }
 0xec2   :  { %2334 = vmatmul.mubr.msk.bf16.vlgmr.msra.gmra.mrb[32].mxu1 %vm309_vm9, %v2871_v34 }
 0xec3   :  { %2344 = vmatpush3.bf16.msra.mxu1 %v1319_v44  ;;  %2345 = vmatprep.mubr.msk.bf16.mxu1 %vm2588_vm0, %v2587_v1 }
 0xec4   :  { %2355 = vmatprep.subr.bf16.mxu1 %v2587_v1 }
 0xf91   :  { %v1189_v45 = vpop.f32.mrb[24].mxu0 }
 0xf92   :  { %v2329_v38 = vpop.f32.mrb[25].mxu0  ;;  %v1243_v46 = vsel %vm404_vm11, %v1189_v45, -inf }
 0xf93   :  { %1244 = vmax.xlane.f32.xlu1 %v1243_v46  ;;  %v1192_v42 = vpop.f32.mrb[26].mxu0  ;;  %v2461_v38 = vld [vmem:[#allocation2 + $0x60] sm:$0xff]  }
 0xf94   :  { %v2330_v47 = vpop.f32.mrb[27].mxu0 }
 0xf95   :  { %v1237_v48 = vpop.f32.mrb[32].mxu1  ;;  %v2462_v47 = vld [vmem:[#allocation2 + $0x68] sm:$0xff]  }
 0xf96   :  { %v2335_v49 = vpop.f32.mrb[33].mxu1  ;;  %v1246_v50 = vsel %vm404_vm11, %v1237_v48, -inf }
 0xf97   :  { %1247 = vmax.xlane.f32.xlu0 %v1246_v50  ;;  %v1240_v51 = vpop.f32.mrb[34].mxu1 }
 0xf98   :  { %v2336_v52 = vpop.f32.mrb[35].mxu1 }
 0xfa4   :  { %1363 = vrot.lane.b32.xlu1 %v2865_v31, %s2592_s13 }
 0xfad   :  { %1415 = vrot.lane.b32.xlu0 %v2871_v34, %s2591_s12 }
 0xfb1   :  { %1413 = vrot.lane.b32.xlu0 %v2871_v34, %s2592_s13 }
0x1020   :  { %v1245_v54 = vpop.xlane.xlu1 %1244 }
0x1021   :  { %v1249_v57 = vsub.f32 %v1189_v45, %v1245_v54 }
0x1023   :  { %v1251_v58 = vmul.f32 1.442695, %v1249_v57 }
0x1024   :  { %v1248_v59 = vpop.xlane.xlu0 %1247  ;;  %v1364_v63 = vpop.permute.xlu1 %1363 }
0x1025   :  { %2505 = vpow2.f32 %v1251_v58  ;;  %v1250_v60 = vsub.f32 %v1237_v48, %v1248_v59 }
0x1027   :  { %v1253_v61 = vmul.f32 1.442695, %v1250_v60 }
0x1028   :  { %v1416_v56 = vpop.permute.xlu0 %1415 }
0x1029   :  { %2507 = vpow2.f32 %v1253_v61  ;;  %v1421_v5 = vsel %vm309_vm9, %v1416_v56, 0 }
0x102c   :  { %v1414_v6 = vpop.permute.xlu0 %1413 }
0x102f   :  { %v2903_v62 = vpop.eup %2505 }
0x1030   :  { %v1263_v0 = vpack.c.bf16 %v2903_v62, %v2903_v62  ;;  %v1255_v43 = vsel %vm404_vm11, %v2903_v62, 0.0 }
0x1032   :  { %2340 = vmatmul.mubr.msk.bf16.vlgmr.msra.gmra.mrb[28].mxu0 %vm404_vm11, %v1263_v0 }
0x1033   :  { %v2909_v2 = vpop.eup %2507  ;;  %2350 = vmatpush3.bf16.xpose.msra.mxu0 %v1371_v55  ;;  %2351 = vmatprep.mubr.msk.bf16.mxu0 %vm2588_vm0, %v2587_v1 }
0x1034   :  { %v1264_v4 = vpack.c.bf16 %v2909_v2, %v2909_v2  ;;  %2361 = vmatprep.subr.bf16.mxu0 %v2587_v1  ;;  %v1258_v45 = vsel %vm404_vm11, %v2909_v2, 0.0 }
0x1036   :  { %2346 = vmatmul.mubr.msk.bf16.vlgmr.msra.gmra.mrb[36].mxu1 %vm404_vm11, %v1264_v4 }
0x1037   :  { %2356 = vmatpush3.bf16.xpose.msra.mxu1 %v1421_v5  ;;  %2357 = vmatprep.mubr.msk.bf16.mxu1 %vm2588_vm0, %v2587_v1 }
0x1038   :  { %2367 = vmatprep.subr.bf16.mxu1 %v2587_v1 }
0x103a   :  { %2352 = vmatmul.mubr.msk.bf16.vlgmr.msra.gmra.mrb[32].mxu0 %vm309_vm9, %v1364_v63 }
0x103b   :  { %2363 = vmatprep.mubr.msk.bf16.mxu0 %vm2588_vm0, %v2587_v1 }
0x103e   :  { %2358 = vmatmul.mubr.msk.bf16.vlgmr.msra.gmra.mrb[40].mxu1 %vm309_vm9, %v1414_v6 }
0x103f   :  { %2369 = vmatprep.mubr.msk.bf16.mxu1 %vm2588_vm0, %v2587_v1 }
0x1105   :  { %v2927_v3 = vpop.f32.mrb[28].mxu0 }
0x1106   :  { %v2341_v7 = vpop.f32.mrb[29].mxu0 }
0x1107   :  { %v1310_v8 = vpop.f32.mrb[30].mxu0 }
0x1108   :  { %v2342_v9 = vpop.f32.mrb[31].mxu0 }
0x1109   :  { %v2929_v10 = vpop.f32.mrb[36].mxu1 }
0x110a   :  { %v2347_v11 = vpop.f32.mrb[37].mxu1 }
0x110b   :  { %v1358_v12 = vpop.f32.mrb[38].mxu1 }
0x110c   :  { %v2348_v13 = vpop.f32.mrb[39].mxu1  ;;  %v2108_v12 = vld [vmem:[%s3043_s3 + $0x9] ss:$0 sm:$0xff] }
0x110d   :  { %v1407_v14 = vpop.f32.mrb[32].mxu0 }
0x110e   :  { %v2353_v15 = vpop.f32.mrb[33].mxu0  ;;  %v1463_v16 = vsel %vm404_vm11, %v1407_v14, -inf }
0x110f   :  { %1464 = vmax.xlane.f32.xlu0 %v1463_v16  ;;  %v1410_v17 = vpop.f32.mrb[34].mxu0 }
0x1110   :  { %v2354_v18 = vpop.f32.mrb[35].mxu0 }
0x1111   :  { %v1457_v19 = vpop.f32.mrb[40].mxu1 }
0x1112   :  { %v2359_v20 = vpop.f32.mrb[41].mxu1  ;;  %v1466_v21 = vsel %vm404_vm11, %v1457_v19, -inf }
0x1113   :  { %v1460_v22 = vpop.f32.mrb[42].mxu1  ;;  %1467 = vmax.xlane.f32.xlu1 %v1466_v21 }
0x1114   :  { %v2360_v25 = vpop.f32.mrb[43].mxu1 }
0x1124   :  { %1533 = vrot.lane.b32.xlu1 %v2871_v34, %s2593_s14 }
0x1125   :  { %1485 = vrot.lane.b32.xlu0 %v2865_v31, %s2593_s14 }
0x119c   :  { %v1465_v26 = vpop.xlane.xlu0 %1464 }
0x119d   :  { %v1469_v27 = vsub.f32 %v1407_v14, %v1465_v26 }
0x119f   :  { %v1471_v28 = vmul.f32 1.442695, %v1469_v27 }
0x11a0   :  { %v1468_v29 = vpop.xlane.xlu1 %1467  ;;  %v1486_v30 = vpop.permute.xlu0 %1485 }
0x11a1   :  { %2509 = vpow2.f32 %v1471_v28  ;;  %v1470_v32 = vsub.f32 %v1457_v19, %v1468_v29  ;;  %v1491_v33 = vsel %vm432_vm10, %v1486_v30, 0 }
0x11a2   :  { %2362 = vmatpush3.bf16.msra.mxu0 %v1491_v33  ;;  %v2463_v33 = vld [vmem:[#allocation2 + $0x70] sm:$0xff]  }
0x11a3   :  { %v1473_v35 = vmul.f32 1.442695, %v1470_v32  ;;  %2373 = vmatprep.subr.bf16.mxu0 %v2587_v1 }
0x11a4   :  { %v1534_v36 = vpop.permute.xlu1 %1533 }
0x11a5   :  { %2511 = vpow2.f32 %v1473_v35  ;;  %v1539_v34 = vsel %vm432_vm10, %v1534_v36, 0 }
0x11a6   :  { %2368 = vmatpush3.bf16.msra.mxu1 %v1539_v34 }
0x11a7   :  { %2381 = vmatprep.subr.bf16.mxu1 %v2587_v1 }
0x11ab   :  { %v2510_v31 = vpop.eup %2509 }
0x11ac   :  { %v1475_v37 = vsel %vm404_vm11, %v2510_v31, 0.0  ;;  %v1483_v39 = vpack.c.bf16 %v2510_v31, %v2510_v31 }
0x11ad   :  { %1476 = vadd.xlane.f32.xlu0 %v1475_v37 }
0x11ae   :  { %2364 = vmatmul.mubr.msk.bf16.vlgmr.msra.gmra.mrb[36].mxu0 %vm404_vm11, %v1483_v39 }
0x11af   :  { %v2512_v40 = vpop.eup %2511  ;;  %2377 = vmatprep.mubr.msk.bf16.mxu0 %vm2588_vm0, %v2587_v1  ;;  %2374 = vmatpush3.bf16.msra.mxu0 %v2461_v38 }
0x11b0   :  { %v1478_v41 = vsel %vm404_vm11, %v2512_v40, 0.0  ;;  %v1484_v44 = vpack.c.bf16 %v2512_v40, %v2512_v40  ;;  %2375 = vmatprep.subr.bf16.mxu0 %v2587_v1 }
0x11b1   :  { %1479 = vadd.xlane.f32.xlu1 %v1478_v41  ;;  %1256 = vadd.xlane.f32.xlu0 %v1255_v43  ;;  %v2112_v43 = vld [vmem:[%s3043_s3 + $0xa] ss:$0 sm:$0xff] }
0x11b2   :  { %2370 = vmatmul.mubr.msk.bf16.vlgmr.msra.gmra.mrb[44].mxu1 %vm404_vm11, %v1484_v44 }
0x11b3   :  { %2385 = vmatprep.mubr.msk.bf16.mxu1 %vm2588_vm0, %v2587_v1  ;;  %2376 = vmatpush3.bf16.msra.mxu0 %v2462_v47 }
0x11b4   :  { %2389 = vmatprep.subr.bf16.mxu0 %v2587_v1  ;;  %2382 = vmatpush3.bf16.msra.mxu1 %v2463_v33 }
0x11b5   :  { %1259 = vadd.xlane.f32.xlu0 %v1258_v45  ;;  %2383 = vmatprep.subr.bf16.mxu1 %v2587_v1 }
0x123a   :  { %v1477_v46 = vpop.xlane.xlu0 %1476 }
0x123b   :  { %2513 = vrcp.f32 %v1477_v46  ;;  %v2113_v46 = vld [vmem:[%s3043_s3 + $0xb] ss:$0 sm:$0xff] }
0x123e   :  { %v1480_v42 = vpop.xlane.xlu1 %1479  ;;  %v1257_v0 = vpop.xlane.xlu0 %1256 }
0x123f   :  { %2515 = vrcp.f32 %v1480_v42 }
0x1240   :  { %2517 = vrcp.f32 %v1257_v0 }
0x1242   :  { %v1260_v55 = vpop.xlane.xlu0 %1259 }
0x1243   :  { %2519 = vrcp.f32 %v1260_v55 }
0x1245   :  { %v2514_v51 = vpop.eup %2513 }
0x1249   :  { %v2516_v53 = vpop.eup %2515 }
0x124a   :  { %v2518_v2 = vpop.eup %2517 }
0x124b   :  { %v1361_v5 = vmul.f32 %v2518_v2, %v2927_v3 }
0x124d   :  { %v2520_v56 = vpop.eup %2519 }
0x124e   :  { %v1362_v63 = vmul.f32 %v2520_v56, %v2929_v10 }
0x1281   :  { %v1527_v48 = vpop.f32.mrb[36].mxu0 }
0x1282   :  { %v2365_v49 = vpop.f32.mrb[37].mxu0  ;;  %v1581_v57 = vmul.f32 %v2514_v51, %v1527_v48  ;;  %v2466_v51 = vld [vmem:[#allocation2 + $0x88] sm:$0xff]  }
0x1283   :  { %v1530_v50 = vpop.f32.mrb[38].mxu0 }
0x1284   :  { %v2366_v52 = vpop.f32.mrb[39].mxu0  ;;  %v2465_v50 = vld [vmem:[#allocation2 + $0x80] sm:$0xff]  }
0x1285   :  { %v1575_v54 = vpop.f32.mrb[44].mxu1  ;;  %v2467_v52 = vld [vmem:[#allocation2 + $0x90] sm:$0xff]  }
0x1286   :  { %v1582_v58 = vmul.f32 %v2516_v53, %v1575_v54  ;;  %v2371_v59 = vpop.f32.mrb[45].mxu1  ;;  %v2468_v53 = vld [vmem:[#allocation2 + $0x98] sm:$0xff]   ;;  %v2114_v54 = vld [vmem:[%s3043_s3 + $0xc] ss:$0 sm:$0xff] }
0x1287   :  { %v1578_v60 = vpop.f32.mrb[46].mxu1 }
0x1288   :  { %v2436_v61 = vpack.i.bf16 %v1582_v58, %v1581_v57  ;;  %v2372_v62 = vpop.f32.mrb[47].mxu1 }
0x128a   :  { %2437 = vrot.lane.b32.xlu0 %v2436_v61, %s2594_s15 }
0x12fc   :  { %v2438_v4 = vpop.permute.xlu0 %2437 }
0x12fd   :  { %v2440_v6 = vunpack.i.h.bf16 %v2438_v4  ;;  %v2439_v7 = vunpack.i.l.bf16 %v2438_v4 }
0x12ff   :  { %v1592_v8 = vsel %vm309_vm9, %v1362_v63, %v2440_v6  ;;  %v1591_v9 = vsel %vm309_vm9, %v1361_v5, %v2439_v7 }
0x1300   :  { %v1593_v11 = vpack.c.bf16 %v1592_v8, %v1591_v9 }
0x1302   :  { %2378 = vmatmul.mubr.msk.bf16.vlgmr.msra.gmra.mrb[40].mxu0 %vm172_vm8, %v1593_v11 }
0x1303   :  { %2397 = vmatprep.mubr.msk.bf16.mxu0 %vm2588_vm0, %v2587_v1  ;;  %2390 = vmatpush3.bf16.msra.mxu0 %v2465_v50 }
0x1304   :  { %2391 = vmatprep.subr.bf16.mxu0 %v2587_v1 }
0x1307   :  { %2392 = vmatpush3.bf16.msra.mxu0 %v2466_v51 }
0x1308   :  { %2393 = vmatprep.subr.bf16.mxu0 %v2587_v1 }
0x130b   :  { %2394 = vmatpush3.bf16.msra.mxu0 %v2467_v52 }
0x130c   :  { %2395 = vmatprep.subr.bf16.mxu0 %v2587_v1 }
0x130f   :  { %2396 = vmatpush3.bf16.msra.mxu0 %v2468_v53 }
0x13d5   :  { %v1647_v13 = vpop.f32.mrb[40].mxu0 }
0x13d6   :  { %v1648_v3 = vadd.f32 %v2108_v12, %v1647_v13  ;;  %v2379_v14 = vpop.f32.mrb[41].mxu0 }
0x13d7   :  { %v1650_v10 = vpop.f32.mrb[42].mxu0 }
0x13d8   :  { %v1651_v15 = vadd.f32 %v2108_v12, %v1650_v10  ;;  %v2380_v16 = vpop.f32.mrb[43].mxu0  ;;  %v1654_v17 = vadd.f32 %v1648_v3, %v2853_v23 }
0x13da   :  { %v1656_v18 = vsel %vm172_vm8, %v1654_v17, 0.0  ;;  %v1655_v19 = vadd.f32 %v1651_v15, %v2855_v24  ;;  %v2464_v24 = vld [vmem:[#allocation2 + $0x78] sm:$0xff]  }
0x13db   :  { %1657 = vadd.xlane.f32.xlu1 %v1656_v18  ;;  %2384 = vmatpush3.bf16.msra.mxu1 %v2464_v24 }
0x13dc   :  { %v1659_v20 = vsel %vm172_vm8, %v1655_v19, 0.0  ;;  %2401 = vmatprep.subr.bf16.mxu1 %v2587_v1 }
0x13df   :  { %1660 = vadd.xlane.f32.xlu1 %v1659_v20 }
0x1468   :  { %v1658_v21 = vpop.xlane.xlu1 %1657 }
0x1469   :  { %v1662_v22 = vmul.f32 0.03125, %v1658_v21 }
0x146b   :  { %v1664_v25 = vsub.f32 %v1654_v17, %v1662_v22  ;;  %v2118_v17 = vld [vmem:[%s3043_s3 + $0xd] ss:$0 sm:$0xff] }
0x146c   :  { %v1661_v26 = vpop.xlane.xlu1 %1660 }
0x146d   :  { %v1663_v27 = vmul.f32 0.03125, %v1661_v26  ;;  %v1666_v28 = vmul.f32 %v1664_v25, %v1664_v25 }
0x146f   :  { %v1665_v29 = vsub.f32 %v1655_v19, %v1663_v27  ;;  %v1668_v30 = vsel %vm172_vm8, %v1666_v28, 0.0 }
0x1470   :  { %1669 = vadd.xlane.f32.xlu1 %v1668_v30 }
0x1471   :  { %v1667_v32 = vmul.f32 %v1665_v29, %v1665_v29 }
0x1473   :  { %v1671_v23 = vsel %vm172_vm8, %v1667_v32, 0.0 }
0x1474   :  { %1672 = vadd.xlane.f32.xlu1 %v1671_v23 }
0x14fd   :  { %v1670_v35 = vpop.xlane.xlu1 %1669 }
0x14fe   :  { %v1674_v36 = vmul.f32 0.03125, %v1670_v35 }
0x1500   :  { %v1676_v34 = vadd.f32 1e-12, %v1674_v36 }
0x1501   :  { %v1673_v31 = vpop.xlane.xlu1 %1672 }
0x1502   :  { %2521 = vrsqrt.f32 %v1676_v34  ;;  %v1675_v37 = vmul.f32 0.03125, %v1673_v31 }
0x1504   :  { %v1677_v39 = vadd.f32 1e-12, %v1675_v37 }
0x1506   :  { %2523 = vrsqrt.f32 %v1677_v39  ;;  %v2469_v39 = vld [vmem:[%s3044_s4] sm:$0xff]  }
0x150c   :  { %v2522_v40 = vpop.eup %2521 }
0x150d   :  { %v1680_v41 = vmul.f32 %v2522_v40, %v1664_v25  ;;  %v2470_v40 = vld [vmem:[%s3044_s4 + $0x8] sm:$0xff]  }
0x150f   :  { %v1686_v45 = vmul.f32 %v2112_v43, %v1680_v41 }
0x1510   :  { %v2524_v44 = vpop.eup %2523 }
0x1511   :  { %v1681_v38 = vmul.f32 %v2524_v44, %v1665_v29  ;;  %v1692_v47 = vadd.f32 %v2113_v46, %v1686_v45 }
0x1513   :  { %v1687_v42 = vmul.f32 %v2112_v43, %v1681_v38 }
0x1515   :  { %v1693_v48 = vadd.f32 %v2113_v46, %v1687_v42 }
0x1517   :  { %v1694_v49 = vpack.c.bf16 %v1693_v48, %v1692_v47 }
0x1519   :  { %2386 = vmatmul.mubr.msk.bf16.vlgmr.msra.gmra.mrb[48].mxu1 %vm172_vm8, %v1694_v49  ;;  %v2125_v49 = vld [vmem:[%s3043_s3 + $0xf] ss:$0 sm:$0xff] }
0x151a   :  { %2405 = vmatprep.mubr.msk.bf16.mxu1 %vm2588_vm0, %v2587_v1  ;;  %2402 = vmatpush3.bf16.msra.mxu1 %v2469_v39 }
0x151b   :  { %2403 = vmatprep.subr.bf16.mxu1 %v2587_v1 }
0x151e   :  { %2404 = vmatpush3.bf16.msra.mxu1 %v2470_v40 }
0x151f   :  { %2409 = vmatprep.subr.bf16.mxu1 %v2587_v1 }
0x15ec   :  { %v1748_v57 = vpop.f32.mrb[48].mxu1 }
0x15ed   :  { %v1749_v58 = vadd.f32 %v2114_v54, %v1748_v57  ;;  %v2387_v59 = vpop.f32.mrb[49].mxu1 }
0x15ee   :  { %v1751_v60 = vpop.f32.mrb[50].mxu1 }
0x15ef   :  { %v1757_v61 = vmul.f32 0.044715, %v1749_v58  ;;  %v1752_v62 = vadd.f32 %v2114_v54, %v1751_v60  ;;  %v2388_v0 = vpop.f32.mrb[51].mxu1  ;;  %v1755_v13 = vmul.f32 0.5, %v1749_v58 }
0x15f1   :  { %v1759_v55 = vmul.f32 %v1757_v61, %v1749_v58  ;;  %v1758_v2 = vmul.f32 0.044715, %v1752_v62  ;;  %v1756_v3 = vmul.f32 0.5, %v1752_v62 }
0x15f3   :  { %v1761_v56 = vmul.f32 %v1759_v55, %v1749_v58  ;;  %v1760_v4 = vmul.f32 %v1758_v2, %v1752_v62  ;;  %v2471_v2 = vld [vmem:[%s3044_s4 + $0x10] sm:$0xff]  }
0x15f5   :  { %v1763_v5 = vadd.f32 %v1761_v56, %v1749_v58  ;;  %v1762_v63 = vmul.f32 %v1760_v4, %v1752_v62  ;;  %v2472_v56 = vld [vmem:[%s3044_s4 + $0x18] sm:$0xff]   ;;  %v2126_v4 = vld [vmem:[%s3045_s5 + $0x2] ss:$0 sm:$0xff]  ;;  %s2595_s4 = smov [#allocation5]  }
0x15f6   :  { %s2033_s28 = sshll.u32 %s2595_s4, 4  ;;  %s2034_s28 = int_to_ptr.vmem [resolvable:$true] %s2033_s28 }
0x15f7   :  { %v1765_v6 = vmul.f32 0.7978846, %v1763_v5  ;;  %v1764_v7 = vadd.f32 %v1762_v63, %v1752_v62  ;;  %s2557_s1 = scalar_lea.vmem %s2034_s28, 32  ;;  %p2562_p9 = scmp.lt.s32.totalorder %s2034_s28, %s2034_s28 }
0x15f8   :  { %p2558_p8 = scmp.ne.s32.totalorder %s2034_s28, %s2557_s1  ;;  %p2563_p10 = scmp.lt.s32.totalorder %s2557_s1, %s2557_s1 }
0x15f9   :  { %2525 = vtanh.f32 %v1765_v6  ;;  %v1766_v8 = vmul.f32 0.7978846, %v1764_v7 }
0x15fa   :  { %p2564_p11 = por %p2563_p10, %p2562_p9 }
0x15fb   :  { %2527 = vtanh.f32 %v1766_v8 }
0x15fc   :  { %p2565_p12 = pnand %p2564_p11, %p2558_p8 }
0x1603   :  { %v2526_v9 = vpop.eup %2525 }
0x1604   :  { %v1769_v11 = vadd.f32 1.0, %v2526_v9 }
0x1605   :  { %v2528_v12 = vpop.eup %2527 }
0x1606   :  { %v1770_v14 = vadd.f32 1.0, %v2528_v12  ;;  %v1771_v10 = vmul.f32 %v1769_v11, %v1755_v13 }
0x1608   :  { %v1772_v15 = vmul.f32 %v1770_v14, %v1756_v3 }
0x160a   :  { %v1773_v16 = vpack.c.bf16 %v1772_v15, %v1771_v10 }
0x160c   :  { %2398 = vmatmul.mubr.msk.bf16.vlgmr.msra.gmra.mrb[44].mxu0 %vm965_vm12, %v1773_v16 }
0x16df   :  { %v1839_v18 = vpop.f32.mrb[44].mxu0 }
0x16e0   :  { %v1840_v19 = vadd.f32 %v2118_v17, %v1839_v18  ;;  %v2399_v20 = vpop.f32.mrb[45].mxu0 }
0x16e1   :  { %v1842_v21 = vpop.f32.mrb[46].mxu0 }
0x16e2   :  { %v1843_v22 = vadd.f32 %v2118_v17, %v1842_v21  ;;  %v2400_v25 = vpop.f32.mrb[47].mxu0  ;;  %v1846_v26 = vadd.f32 %v1840_v19, %v1692_v47  ;;  %v2124_v47 = vld [vmem:[%s3043_s3 + $0xe] ss:$0 sm:$0xff] }
0x16e4   :  { %v1848_v27 = vsel %vm172_vm8, %v1846_v26, 0.0  ;;  %v1847_v28 = vadd.f32 %v1843_v22, %v1693_v48 }
0x16e5   :  { %1849 = vadd.xlane.f32.xlu1 %v1848_v27 }
0x16e6   :  { %v1851_v29 = vsel %vm172_vm8, %v1847_v28, 0.0 }
0x16e7   :  { %1852 = vadd.xlane.f32.xlu0 %v1851_v29 }
0x1772   :  { %v1850_v30 = vpop.xlane.xlu1 %1849 }
0x1773   :  { %v1854_v32 = vmul.f32 0.03125, %v1850_v30 }
0x1774   :  { %v1853_v23 = vpop.xlane.xlu0 %1852 }
0x1775   :  { %v1855_v33 = vmul.f32 0.03125, %v1853_v23  ;;  %v1856_v24 = vsub.f32 %v1846_v26, %v1854_v32 }
0x1777   :  { %v1857_v35 = vsub.f32 %v1847_v28, %v1855_v33  ;;  %v1858_v31 = vmul.f32 %v1856_v24, %v1856_v24 }
0x1779   :  { %v1859_v36 = vmul.f32 %v1857_v35, %v1857_v35  ;;  %v1860_v37 = vsel %vm172_vm8, %v1858_v31, 0.0 }
0x177b   :  { %v1863_v34 = vsel %vm172_vm8, %v1859_v36, 0.0 }
0x177c   :  { %1864 = vadd.xlane.f32.xlu1 %v1863_v34 }
0x1780   :  { %1861 = vadd.xlane.f32.xlu1 %v1860_v37 }
0x1809   :  { %v1865_v41 = vpop.xlane.xlu1 %1864 }
0x180a   :  { %v1867_v43 = vmul.f32 0.03125, %v1865_v41 }
0x180c   :  { %v1869_v44 = vadd.f32 1e-12, %v1867_v43 }
0x180d   :  { %v1862_v45 = vpop.xlane.xlu1 %1861 }
0x180e   :  { %2529 = vrsqrt.f32 %v1869_v44  ;;  %v1866_v38 = vmul.f32 0.03125, %v1862_v45 }
0x1810   :  { %v1868_v46 = vadd.f32 1e-12, %v1866_v38 }
0x1812   :  { %2531 = vrsqrt.f32 %v1868_v46 }
0x1818   :  { %v2530_v42 = vpop.eup %2529 }
0x1819   :  { %v1873_v48 = vmul.f32 %v2530_v42, %v1857_v35 }
0x181b   :  { %v1879_v50 = vmul.f32 %v2124_v47, %v1873_v48 }
0x181c   :  { %v2532_v51 = vpop.eup %2531 }
0x181d   :  { %v1885_v52 = vadd.f32 %v2125_v49, %v1879_v50  ;;  %v1872_v53 = vmul.f32 %v2532_v51, %v1856_v24 }
0x181f   :  { %v1897_v54 = vpack.c.bf16 %v1885_v52, %v1885_v52  ;;  %v1878_v57 = vmul.f32 %v2124_v47, %v1872_v53 }
0x1821   :  { %v1884_v58 = vadd.f32 %v2125_v49, %v1878_v57  ;;  %v1905_v59 = vunpack.c.l.b16 %v1897_v54 }
0x1823   :  { %v1896_v60 = vpack.c.bf16 %v1884_v58, %v1884_v58  ;;  %v1906_v62 = vrot.slane %v1905_v59, 7 }
0x1825   :  { %v1904_v61 = vunpack.c.l.b16 %v1896_v60 }
0x1827   :  { %v1908_v0 = vsel %vm1907_vm13, %v1906_v62, %v1904_v61 }
0x1828   :  { %v1909_v55 = vpack.c.b16 %v1908_v0, %v1908_v0 }
0x182a   :  { %2406 = vmatmul.mubr.msk.bf16.vlgmr.msra.gmra.mrb[52].mxu1 %vm172_vm8, %v1909_v55 }
0x182b   :  { %2413 = vmatprep.mubr.msk.bf16.mxu1 %vm2588_vm0, %v2587_v1  ;;  %2410 = vmatpush3.bf16.msra.mxu1 %v2471_v2 }
0x182c   :  { %2411 = vmatprep.subr.bf16.mxu1 %v2587_v1  ;;  %v2130_v1 = vld [vmem:[%s3045_s5 + $0x3] ss:$0 sm:$0xff] }
0x182f   :  { %2412 = vmatpush3.bf16.msra.mxu1 %v2472_v56 }
0x18fd   :  { %v1959_v5 = vpop.f32.mrb[52].mxu1 }
0x18fe   :  { %v1960_v63 = vadd.f32 %v2126_v4, %v1959_v5  ;;  %v2407_v6 = vpop.f32.mrb[53].mxu1 }
0x18ff   :  { %v1962_v7 = vpop.f32.mrb[54].mxu1 }
0x1900   :  { %2533 = vtanh.f32 %v1960_v63  ;;  %v2408_v8 = vpop.f32.mrb[55].mxu1 }
0x190a   :  { %v2534_v9 = vpop.eup %2533 }
0x190b   :  { %v1966_v11 = vpack.c.bf16 %v2534_v9, %v2534_v9 }
0x190d   :  { %2414 = vmatmul.mubr.msk.bf16.vlgmr.msra.gmra.mrb[56].mxu1 %vm172_vm8, %v1966_v11 }
0x19e0   :  { %v2020_v12 = vpop.f32.mrb[56].mxu1 }
0x19e1   :  { %v2021_v13 = vadd.f32 %v2130_v1, %v2020_v12  ;;  %v2415_v3 = vpop.f32.mrb[57].mxu1 }
0x19e2   :  { %v2023_v14 = vpop.f32.mrb[58].mxu1 }
0x19e3   :  { %2026 = vst [vmem:[#allocation5] sm:$0x3] %v2021_v13  ;;  %v2416_v10 = vpop.f32.mrb[59].mxu1 }
0x19e4   :  { %2568 = shalt.err (!%p2565_p12)
}
0x19e5   :  { %s2569_s5 = scalar_lea.hbm %s3046_s6, 32 }
0x19e6   :  { %p2570_p13 = scmp.ne.s32.totalorder %s3046_s6, %s2569_s5  ;;  %p2573_p0 = scmp.lt.u32.totalorder %s2569_s5, %s3046_s6 }
0x19e8   :  { %p2575_p1 = pnand %p2573_p0, %p2570_p13 }
0x19ea   :  { %2578 = shalt.err (!%p2575_p1)
}
0x19eb   :  { %2036 = dma.vmem_to_hbm [thread:$0]  %s2034_s28, 32, %s3046_s6, [#allocation4]  }
0x19ec   :  { %2581 = dma.done.wait [#allocation4], 32  }
0x19ed   :  { %2582 = vsyncadd [#allocation4], 4294967264 }
0x19ee   :  { %2040 = vsyncpa [#allocation3], 1 }
0x19ef   :  { %2041 = vsyncpa [#allocation4], 1 }

</bundles_post_ra>
